<compile_context>
chip_gen: v7x
topology: tpu7x:2x2x1
jax: 0.10.0
libtpu: 0.0.40
codegen_flags: <defaults>
</compile_context>

<pallas_src>
import math
from functools import partial

import jax
import jax.numpy as jnp
from jax.experimental import pallas as pl
from jax.experimental.pallas import tpu as pltpu


def _round_up(x, m):
    return (x + m - 1) // m * m


# ---------------------------------------------------------------------------
# Kernel
# ---------------------------------------------------------------------------
def _head_kernel(scale, kv_len, causal,
                 x_ref, y_ref, wq_ref, wk_ref, wv_ref, o_ref):
    Bb, Tq, C1 = x_ref.shape
    _, Tk, C2 = y_ref.shape
    Dp = wq_ref.shape[1]

    # Lane-dense projections: activations arrive already in bf16; flatten
    # (Bb, T, C) -> (Bb*T, C) so each projection is one big MXU matmul with
    # f32 accumulation (weights pre-transposed in the wrapper -> no .T here).
    xb = x_ref[...].reshape(Bb * Tq, C1)
    yb = y_ref[...].reshape(Bb * Tk, C2)

    q = jnp.dot(xb, wq_ref[...], preferred_element_type=jnp.float32)
    k = jnp.dot(yb, wk_ref[...], preferred_element_type=jnp.float32)
    v = jnp.dot(yb, wv_ref[...], preferred_element_type=jnp.float32)

    # Fold 1/sqrt(d) into q (Dp lanes; cheaper than scaling the Tk-wide att),
    # then feed the MXU bf16 operands for the score matmul (f32 accumulation).
    q = (q * scale).reshape(Bb, Tq, Dp).astype(jnp.bfloat16)
    k = k.reshape(Bb, Tk, Dp).astype(jnp.bfloat16)
    v = v.reshape(Bb, Tk, Dp).astype(jnp.bfloat16)

    att = jnp.einsum('bqd,bkd->bqk', q, k,
                     preferred_element_type=jnp.float32)

    # Mask padded key positions (zero-padded rows of y would otherwise get
    # softmax weight) and, optionally, the causal upper triangle. kv_len and
    # causal are Python-static, so these branches are compile-time.
    if (kv_len < Tk) or causal:
        col = jax.lax.broadcasted_iota(jnp.int32, (Tq, Tk), 1)
        mask = col < kv_len
        if causal:
            # Matches torch.tril over the (Tq, Tk) score matrix.
            row = jax.lax.broadcasted_iota(jnp.int32, (Tq, Tk), 0)
            mask = jnp.logical_and(mask, col <= row)
        att = jnp.where(mask[None, :, :], att, -1e30)

    # Numerically-stable softmax statistics in f32. Normalization is applied
    # AFTER the PV matmul (on the (Bb,Tq,Dp) output instead of the
    # (Bb,Tq,Tk) probabilities); p goes to the MXU in bf16 straight from exp.
    m = jnp.max(att, axis=-1, keepdims=True)
    p = jnp.exp(att - m)
    denom = jnp.sum(p, axis=-1, keepdims=True)

    out = jnp.einsum('bqk,bkd->bqd', p.astype(jnp.bfloat16), v,
                     preferred_element_type=jnp.float32)
    out = out * pl.reciprocal(denom, approx=True)   # EUP slot, nearly free
    o_ref[...] = out.astype(o_ref.dtype)


# ---------------------------------------------------------------------------
# Wrapper
# ---------------------------------------------------------------------------
def _vmem_bytes(Bb, Tqp, Tkp, C1p, C2p, Dp):
    """Rough per-grid-step VMEM footprint (bytes): double-buffered x/y/out
    blocks + single-buffered weights + in-kernel intermediates."""
    bf, f32 = 2, 4
    x_blk = Bb * Tqp * C1p * bf
    y_blk = Bb * Tkp * C2p * bf
    o_blk = Bb * Tqp * Dp * f32
    w_blk = (C1p + 2 * C2p) * Dp * bf                 # single-buffered weights
    inter = (Bb * Tqp * Dp * (f32 + bf)               # q (f32 + bf16 copy)
             + 2 * Bb * Tkp * Dp * (f32 + bf)         # k, v
             + 2 * Bb * Tqp * Tkp * f32               # att, exp(att)
             + Bb * Tqp * Tkp * bf                    # bf16 p
             + Bb * Tqp * Dp * f32)                   # PV accumulator
    return 2 * (x_blk + y_blk + o_blk) + w_blk + inter


def head_attention(x, y, wq, wk, wv, d, *, causal_mask=False, block_b=None,
                   weight_dtype=jnp.bfloat16, act_dtype=jnp.bfloat16,
                   out_dtype=jnp.float32):
    """x: (B, Tq, c1), y: (B, Tk, c2); wq: (d, c1), wk/wv: (d, c2)
    (PyTorch nn.Linear weight layout, no bias). Returns (B, Tq, d)."""
    B, Tq, c1 = x.shape
    By, Tk, c2 = y.shape
    assert B == By
    assert wq.shape == (d, c1) and wk.shape == (d, c2) and wv.shape == (d, c2)

    # Lane/sublane-friendly padded shapes (T padded to 16 for bf16 packing).
    C1p = _round_up(c1, 128)
    C2p = _round_up(c2, 128)
    Dp = _round_up(d, 128)         # lane-dense output stores, MXU-friendly N
    Tqp = _round_up(Tq, 16)
    Tkp = _round_up(Tk, 16)

    # --- choose fused batch block ------------------------------------------
    # Target Bb*Tqp >= 256 (fill the 256-row MXU on v6e/v7x projections),
    # subject to a conservative 48 MiB VMEM budget (fits v7x's 64 MiB with
    # headroom), and keep >= 2 grid steps when B >= 2 so the "parallel" batch
    # axis can be split across v7x's two TensorCores (and cross-step prefetch
    # exists).
    vmem_budget = 48 << 20
    Bb = block_b if block_b is not None else max(1, pl.cdiv(256, Tqp))
    Bb = max(1, min(Bb, B))
    while Bb > 1 and _vmem_bytes(Bb, Tqp, Tkp, C1p, C2p, Dp) > vmem_budget:
        Bb -= 1
    if B >= 2:
        Bb = min(Bb, max(1, (B + 1) // 2))
    Bp = _round_up(B, Bb)
    grid = (Bp // Bb,)

    vmem_limit = int(min(
        max(int(_vmem_bytes(Bb, Tqp, Tkp, C1p, C2p, Dp) * 1.5), 32 << 20),
        64 << 20))

    # --- pad / cast operands (pads skipped when already aligned) ------------
    def pad_act(a, Bq, Tp, Cp):
        a = a.astype(act_dtype)                    # bf16 in HBM: half the DMA
        b_, t_, c_ = a.shape
        if (b_, t_, c_) == (Bq, Tp, Cp):
            return a
        return jnp.pad(a, ((0, Bq - b_), (0, Tp - t_), (0, Cp - c_)))

    xp = pad_act(x, Bp, Tqp, C1p)
    yp = pad_act(y, Bp, Tkp, C2p)

    # Pre-transpose weights once in the wrapper (no in-kernel .T), zero-pad to
    # (Cp, Dp), cast to bf16.
    def prep_w(w, Cp):
        wt = w.T.astype(weight_dtype)
        if wt.shape == (Cp, Dp):
            return wt
        return jnp.pad(wt, ((0, Cp - wt.shape[0]), (0, Dp - wt.shape[1])))

    wq_t = prep_w(wq, C1p)
    wk_t = prep_w(wk, C2p)
    wv_t = prep_w(wv, C2p)

    kernel = partial(_head_kernel, 1.0 / math.sqrt(d), Tk, bool(causal_mask))

    def build_call(weight_mode):
        def wspec(Cp):
            # Constant-index weight blocks: fetched once and revisited; a
            # single buffer saves (C1p + 2*C2p)*Dp*2 bytes of VMEM.
            if weight_mode is None:
                return pl.BlockSpec((Cp, Dp), lambda b: (0, 0))
            return pl.BlockSpec((Cp, Dp), lambda b: (0, 0),
                                pipeline_mode=weight_mode)

        return pl.pallas_call(
            kernel,
            out_shape=jax.ShapeDtypeStruct((Bp, Tqp, Dp), out_dtype),
            grid_spec=pltpu.PrefetchScalarGridSpec(
                num_scalar_prefetch=0,
                grid=grid,
                in_specs=[
                    pl.BlockSpec((Bb, Tqp, C1p), lambda b: (b, 0, 0)),
                    pl.BlockSpec((Bb, Tkp, C2p), lambda b: (b, 0, 0)),
                    wspec(C1p),
                    wspec(C2p),
                    wspec(C2p),
                ],
                out_specs=pl.BlockSpec((Bb, Tqp, Dp), lambda b: (b, 0, 0)),
            ),
            compiler_params=pltpu.CompilerParams(
                dimension_semantics=("parallel",),   # batch across TCs (v7x)
                vmem_limit_bytes=vmem_limit,
            ),
        )

    try:
        out = build_call(pl.Buffered(1))(xp, yp, wq_t, wk_t, wv_t)
    except Exception:
        # Fallback for jax builds without BlockSpec pipeline_mode support.
        out = build_call(None)(xp, yp, wq_t, wk_t, wv_t)

    return out[:B, :Tq, :d]


# ---------------------------------------------------------------------------
# Pure-JAX reference (mirrors the PyTorch _Head.forward, f32 everywhere)
# ---------------------------------------------------------------------------
def reference(x, y, wq, wk, wv, d, causal_mask=False):
    q = jnp.einsum('btc,dc->btd', x, wq)
    k = jnp.einsum('btc,dc->btd', y, wk)
    v = jnp.einsum('btc,dc->btd', y, wv)
    att = jnp.einsum('bqd,bkd->bqk', q, k) / math.sqrt(d)
    if causal_mask:
        Tq, Tk = att.shape[-2:]
        tri = jnp.tril(jnp.ones((Tq, Tk), jnp.float32))
        att = jnp.where(tri == 0, -jnp.inf, att)
    att = jax.nn.softmax(att, axis=-1)
    return jnp.einsum('bqk,bkd->bqd', att, v)


if __name__ == "__main__":
    B, Tq, Tk = 2, 8, 16
    c1, c2, d = 32, 48, 32

    key = jax.random.PRNGKey(0)
    kx, ky, kq, kk, kv = jax.random.split(key, 5)

    x = jax.random.normal(kx, (B, Tq, c1), jnp.float32)
    y = jax.random.normal(ky, (B, Tk, c2), jnp.float32)

    def lin(k, out_f, in_f):
        bound = 1.0 / math.sqrt(in_f)
        return jax.random.uniform(k, (out_f, in_f), jnp.float32, -bound, bound)

    wq = lin(kq, d, c1)
    wk = lin(kk, d, c2)
    wv = lin(kv, d, c2)

    for causal in (False, True):   # module default is False; also check tril
        out = jax.block_until_ready(
            head_attention(x, y, wq, wk, wv, d, causal_mask=causal))
        ref = jax.block_until_ready(
            reference(x, y, wq, wk, wv, d, causal_mask=causal))
        assert out.shape == (B, Tq, d)
        err = float(jnp.max(jnp.abs(out - ref)))
        # bf16 operands on all MXU matmuls (f32 accumulation) -> loose tol.
        assert jnp.allclose(out, ref, atol=5e-2, rtol=5e-2), (
            f"causal={causal}: mismatch vs reference, max abs diff = {err}")

    print("KERNEL_OK")
</pallas_src>

<mosaic_0001>
module attributes {stable_mosaic.version = 11 : i64} {
  func.func @_head_kernel(%arg0: i32, %arg1: memref<1x16x128xbf16, #tpu.memory_space<vmem>>, %arg2: memref<1x16x128xbf16, #tpu.memory_space<vmem>>, %arg3: memref<128x128xbf16, #tpu.memory_space<vmem>>, %arg4: memref<128x128xbf16, #tpu.memory_space<vmem>>, %arg5: memref<128x128xbf16, #tpu.memory_space<vmem>>, %arg6: memref<1x16x128xf32, #tpu.memory_space<vmem>>) attributes {dimension_semantics = [#tpu.dimension_semantics<parallel>], iteration_bounds = array<i64: 2>, scalar_prefetch = 0 : i64, scratch_operands = 0 : i64, tpu.core_type = #tpu.core_type<tc>, window_params = [{transform_indices = @transform_0, window_bounds = array<i64: 1, 16, 128>}, {transform_indices = @transform_1, window_bounds = array<i64: 1, 16, 128>}, {pipeline_mode = #tpu.pipeline_mode<synchronous>, transform_indices = @transform_2, window_bounds = array<i64: 128, 128>}, {pipeline_mode = #tpu.pipeline_mode<synchronous>, transform_indices = @transform_3, window_bounds = array<i64: 128, 128>}, {pipeline_mode = #tpu.pipeline_mode<synchronous>, transform_indices = @transform_4, window_bounds = array<i64: 128, 128>}, {transform_indices = @transform_5, window_bounds = array<i64: 1, 16, 128>}]} {
    %c0 = arith.constant 0 : index
    %c0_0 = arith.constant 0 : index
    %c0_1 = arith.constant 0 : index
    %0 = vector.load %arg1[%c0, %c0_0, %c0_1] : memref<1x16x128xbf16, #tpu.memory_space<vmem>>, vector<1x16x128xbf16>
    %1 = vector.shape_cast %0 : vector<1x16x128xbf16> to vector<16x128xbf16>
    %c0_2 = arith.constant 0 : index
    %c0_3 = arith.constant 0 : index
    %c0_4 = arith.constant 0 : index
    %2 = vector.load %arg2[%c0_2, %c0_3, %c0_4] : memref<1x16x128xbf16, #tpu.memory_space<vmem>>, vector<1x16x128xbf16>
    %3 = vector.shape_cast %2 : vector<1x16x128xbf16> to vector<16x128xbf16>
    %c0_5 = arith.constant 0 : index
    %c0_6 = arith.constant 0 : index
    %4 = vector.load %arg3[%c0_5, %c0_6] : memref<128x128xbf16, #tpu.memory_space<vmem>>, vector<128x128xbf16>
    %cst = arith.constant dense<0.000000e+00> : vector<16x128xf32>
    %5 = tpu.matmul %1, %4, %cst {dimension_numbers = #tpu.dot_dimension_numbers<[1], [0], [0], [1], [0, 0, 1, 1], [], []>} : vector<16x128xbf16>, vector<128x128xbf16>, vector<16x128xf32> -> vector<16x128xf32>
    %c0_7 = arith.constant 0 : index
    %c0_8 = arith.constant 0 : index
    %6 = vector.load %arg4[%c0_7, %c0_8] : memref<128x128xbf16, #tpu.memory_space<vmem>>, vector<128x128xbf16>
    %cst_9 = arith.constant dense<0.000000e+00> : vector<16x128xf32>
    %7 = tpu.matmul %3, %6, %cst_9 {dimension_numbers = #tpu.dot_dimension_numbers<[1], [0], [0], [1], [0, 0, 1, 1], [], []>} : vector<16x128xbf16>, vector<128x128xbf16>, vector<16x128xf32> -> vector<16x128xf32>
    %c0_10 = arith.constant 0 : index
    %c0_11 = arith.constant 0 : index
    %8 = vector.load %arg5[%c0_10, %c0_11] : memref<128x128xbf16, #tpu.memory_space<vmem>>, vector<128x128xbf16>
    %cst_12 = arith.constant dense<0.000000e+00> : vector<16x128xf32>
    %9 = tpu.matmul %3, %8, %cst_12 {dimension_numbers = #tpu.dot_dimension_numbers<[1], [0], [0], [1], [0, 0, 1, 1], [], []>} : vector<16x128xbf16>, vector<128x128xbf16>, vector<16x128xf32> -> vector<16x128xf32>
    %cst_13 = arith.constant 0.176776692 : f32
    %10 = vector.broadcast %cst_13 : f32 to vector<16x128xf32>
    %11 = arith.mulf %5, %10 : vector<16x128xf32>
    %12 = vector.shape_cast %11 : vector<16x128xf32> to vector<1x16x128xf32>
    %13 = arith.truncf %12 : vector<1x16x128xf32> to vector<1x16x128xbf16>
    %14 = vector.shape_cast %7 : vector<16x128xf32> to vector<1x16x128xf32>
    %15 = arith.truncf %14 : vector<1x16x128xf32> to vector<1x16x128xbf16>
    %16 = vector.shape_cast %9 : vector<16x128xf32> to vector<1x16x128xf32>
    %17 = arith.truncf %16 : vector<1x16x128xf32> to vector<1x16x128xbf16>
    "tpu.trace_start"() <{level = 10 : i32, message = "bqd,bkd->bqk"}> : () -> ()
    %cst_14 = arith.constant dense<0.000000e+00> : vector<1x16x16xf32>
    %18 = tpu.matmul %13, %15, %cst_14 {dimension_numbers = #tpu.dot_dimension_numbers<[2], [2], [1], [1], [0, 0, 0, 1, 1, 1], [0], [0]>} : vector<1x16x128xbf16>, vector<1x16x128xbf16>, vector<1x16x16xf32> -> vector<1x16x16xf32>
    "tpu.trace_stop"() : () -> ()
    %cst_15 = arith.constant dense<0xFF800000> : vector<1x16xf32>
    %19 = vector.multi_reduction <maximumf>, %18, %cst_15 [2] : vector<1x16x16xf32> to vector<1x16xf32>
    %20 = vector.shape_cast %19 : vector<1x16xf32> to vector<1x16x1xf32>
    %21 = vector.broadcast %20 : vector<1x16x1xf32> to vector<1x16x16xf32>
    %22 = arith.subf %18, %21 : vector<1x16x16xf32>
    %23 = math.exp %22 : vector<1x16x16xf32>
    %cst_16 = arith.constant dense<0.000000e+00> : vector<1x16xf32>
    %24 = vector.multi_reduction <add>, %23, %cst_16 [2] : vector<1x16x16xf32> to vector<1x16xf32>
    %25 = vector.shape_cast %24 : vector<1x16xf32> to vector<1x16x1xf32>
    %26 = arith.truncf %23 : vector<1x16x16xf32> to vector<1x16x16xbf16>
    "tpu.trace_start"() <{level = 10 : i32, message = "bqk,bkd->bqd"}> : () -> ()
    %cst_17 = arith.constant dense<0.000000e+00> : vector<1x16x128xf32>
    %27 = tpu.matmul %26, %17, %cst_17 {dimension_numbers = #tpu.dot_dimension_numbers<[2], [1], [1], [2], [0, 0, 0, 1, 1, 2], [0], [0]>} : vector<1x16x16xbf16>, vector<1x16x128xbf16>, vector<1x16x128xf32> -> vector<1x16x128xf32>
    "tpu.trace_stop"() : () -> ()
    %28 = tpu.reciprocal %25 {approx = true} : vector<1x16x1xf32> -> vector<1x16x1xf32>
    %29 = vector.broadcast %28 : vector<1x16x1xf32> to vector<1x16x128xf32>
    %30 = arith.mulf %27, %29 : vector<1x16x128xf32>
    %c0_18 = arith.constant 0 : index
    %c0_19 = arith.constant 0 : index
    %c0_20 = arith.constant 0 : index
    %31 = vector.load %arg6[%c0_18, %c0_19, %c0_20] : memref<1x16x128xf32, #tpu.memory_space<vmem>>, vector<1x16x128xf32>
    tpu.vector_store %arg6[%c0_18, %c0_19, %c0_20], %30 {strides = array<i32>} : memref<1x16x128xf32, #tpu.memory_space<vmem>>, vector<1x16x128xf32>,
    return
  }
  func.func @transform_0(%arg0: i32) -> (i32, i32, i32) {
    %c0_i32 = arith.constant 0 : i32
    %c0_i32_0 = arith.constant 0 : i32
    %c0_i32_1 = arith.constant 0 : i32
    return %arg0, %c0_i32, %c0_i32_0 : i32, i32, i32
  }
  func.func @transform_1(%arg0: i32) -> (i32, i32, i32) {
    %c0_i32 = arith.constant 0 : i32
    %c0_i32_0 = arith.constant 0 : i32
    %c0_i32_1 = arith.constant 0 : i32
    return %arg0, %c0_i32, %c0_i32_0 : i32, i32, i32
  }
  func.func @transform_2(%arg0: i32) -> (i32, i32) {
    %c0_i32 = arith.constant 0 : i32
    %c0_i32_0 = arith.constant 0 : i32
    %c0_i32_1 = arith.constant 0 : i32
    return %c0_i32, %c0_i32_0 : i32, i32
  }
  func.func @transform_3(%arg0: i32) -> (i32, i32) {
    %c0_i32 = arith.constant 0 : i32
    %c0_i32_0 = arith.constant 0 : i32
    %c0_i32_1 = arith.constant 0 : i32
    return %c0_i32, %c0_i32_0 : i32, i32
  }
  func.func @transform_4(%arg0: i32) -> (i32, i32) {
    %c0_i32 = arith.constant 0 : i32
    %c0_i32_0 = arith.constant 0 : i32
    %c0_i32_1 = arith.constant 0 : i32
    return %c0_i32, %c0_i32_0 : i32, i32
  }
  func.func @transform_5(%arg0: i32) -> (i32, i32, i32) {
    %c0_i32 = arith.constant 0 : i32
    %c0_i32_0 = arith.constant 0 : i32
    %c0_i32_1 = arith.constant 0 : i32
    return %arg0, %c0_i32, %c0_i32_0 : i32, i32, i32
  }
}

module attributes {stable_mosaic.version = 11 : i64} {
  func.func @_head_kernel(%arg0: i32, %arg1: memref<1x16x128xbf16, #tpu.memory_space<vmem>>, %arg2: memref<1x16x128xbf16, #tpu.memory_space<vmem>>, %arg3: memref<128x128xbf16, #tpu.memory_space<vmem>>, %arg4: memref<128x128xbf16, #tpu.memory_space<vmem>>, %arg5: memref<128x128xbf16, #tpu.memory_space<vmem>>, %arg6: memref<1x16x128xf32, #tpu.memory_space<vmem>>) attributes {dimension_semantics = [#tpu.dimension_semantics<parallel>], iteration_bounds = array<i64: 2>, scalar_prefetch = 0 : i64, scratch_operands = 0 : i64, tpu.core_type = #tpu.core_type<tc>, window_params = [{transform_indices = @transform_0, window_bounds = array<i64: 1, 16, 128>}, {transform_indices = @transform_1, window_bounds = array<i64: 1, 16, 128>}, {pipeline_mode = #tpu.pipeline_mode<synchronous>, transform_indices = @transform_2, window_bounds = array<i64: 128, 128>}, {pipeline_mode = #tpu.pipeline_mode<synchronous>, transform_indices = @transform_3, window_bounds = array<i64: 128, 128>}, {pipeline_mode = #tpu.pipeline_mode<synchronous>, transform_indices = @transform_4, window_bounds = array<i64: 128, 128>}, {transform_indices = @transform_5, window_bounds = array<i64: 1, 16, 128>}]} {
    %c0 = arith.constant 0 : index
    %c0_0 = arith.constant 0 : index
    %c0_1 = arith.constant 0 : index
    %0 = vector.load %arg1[%c0, %c0_0, %c0_1] : memref<1x16x128xbf16, #tpu.memory_space<vmem>>, vector<1x16x128xbf16>
    %1 = vector.shape_cast %0 : vector<1x16x128xbf16> to vector<16x128xbf16>
    %c0_2 = arith.constant 0 : index
    %c0_3 = arith.constant 0 : index
    %c0_4 = arith.constant 0 : index
    %2 = vector.load %arg2[%c0_2, %c0_3, %c0_4] : memref<1x16x128xbf16, #tpu.memory_space<vmem>>, vector<1x16x128xbf16>
    %3 = vector.shape_cast %2 : vector<1x16x128xbf16> to vector<16x128xbf16>
    %c0_5 = arith.constant 0 : index
    %c0_6 = arith.constant 0 : index
    %4 = vector.load %arg3[%c0_5, %c0_6] : memref<128x128xbf16, #tpu.memory_space<vmem>>, vector<128x128xbf16>
    %cst = arith.constant dense<0.000000e+00> : vector<16x128xf32>
    %5 = tpu.matmul %1, %4, %cst {dimension_numbers = #tpu.dot_dimension_numbers<[1], [0], [0], [1], [0, 0, 1, 1], [], []>} : vector<16x128xbf16>, vector<128x128xbf16>, vector<16x128xf32> -> vector<16x128xf32>
    %c0_7 = arith.constant 0 : index
    %c0_8 = arith.constant 0 : index
    %6 = vector.load %arg4[%c0_7, %c0_8] : memref<128x128xbf16, #tpu.memory_space<vmem>>, vector<128x128xbf16>
    %cst_9 = arith.constant dense<0.000000e+00> : vector<16x128xf32>
    %7 = tpu.matmul %3, %6, %cst_9 {dimension_numbers = #tpu.dot_dimension_numbers<[1], [0], [0], [1], [0, 0, 1, 1], [], []>} : vector<16x128xbf16>, vector<128x128xbf16>, vector<16x128xf32> -> vector<16x128xf32>
    %c0_10 = arith.constant 0 : index
    %c0_11 = arith.constant 0 : index
    %8 = vector.load %arg5[%c0_10, %c0_11] : memref<128x128xbf16, #tpu.memory_space<vmem>>, vector<128x128xbf16>
    %cst_12 = arith.constant dense<0.000000e+00> : vector<16x128xf32>
    %9 = tpu.matmul %3, %8, %cst_12 {dimension_numbers = #tpu.dot_dimension_numbers<[1], [0], [0], [1], [0, 0, 1, 1], [], []>} : vector<16x128xbf16>, vector<128x128xbf16>, vector<16x128xf32> -> vector<16x128xf32>
    %cst_13 = arith.constant 0.176776692 : f32
    %10 = vector.broadcast %cst_13 : f32 to vector<16x128xf32>
    %11 = arith.mulf %5, %10 : vector<16x128xf32>
    %12 = vector.shape_cast %11 : vector<16x128xf32> to vector<1x16x128xf32>
    %13 = arith.truncf %12 : vector<1x16x128xf32> to vector<1x16x128xbf16>
    %14 = vector.shape_cast %7 : vector<16x128xf32> to vector<1x16x128xf32>
    %15 = arith.truncf %14 : vector<1x16x128xf32> to vector<1x16x128xbf16>
    %16 = vector.shape_cast %9 : vector<16x128xf32> to vector<1x16x128xf32>
    %17 = arith.truncf %16 : vector<1x16x128xf32> to vector<1x16x128xbf16>
    "tpu.trace_start"() <{level = 10 : i32, message = "bqd,bkd->bqk"}> : () -> ()
    %cst_14 = arith.constant dense<0.000000e+00> : vector<1x16x16xf32>
    %18 = tpu.matmul %13, %15, %cst_14 {dimension_numbers = #tpu.dot_dimension_numbers<[2], [2], [1], [1], [0, 0, 0, 1, 1, 1], [0], [0]>} : vector<1x16x128xbf16>, vector<1x16x128xbf16>, vector<1x16x16xf32> -> vector<1x16x16xf32>
    "tpu.trace_stop"() : () -> ()
    %cst_15 = arith.constant dense<0xFF800000> : vector<1x16xf32>
    %19 = vector.multi_reduction <maximumf>, %18, %cst_15 [2] : vector<1x16x16xf32> to vector<1x16xf32>
    %20 = vector.shape_cast %19 : vector<1x16xf32> to vector<1x16x1xf32>
    %21 = vector.broadcast %20 : vector<1x16x1xf32> to vector<1x16x16xf32>
    %22 = arith.subf %18, %21 : vector<1x16x16xf32>
    %23 = math.exp %22 : vector<1x16x16xf32>
    %cst_16 = arith.constant dense<0.000000e+00> : vector<1x16xf32>
    %24 = vector.multi_reduction <add>, %23, %cst_16 [2] : vector<1x16x16xf32> to vector<1x16xf32>
    %25 = vector.shape_cast %24 : vector<1x16xf32> to vector<1x16x1xf32>
    %26 = arith.truncf %23 : vector<1x16x16xf32> to vector<1x16x16xbf16>
    "tpu.trace_start"() <{level = 10 : i32, message = "bqk,bkd->bqd"}> : () -> ()
    %cst_17 = arith.constant dense<0.000000e+00> : vector<1x16x128xf32>
    %27 = tpu.matmul %26, %17, %cst_17 {dimension_numbers = #tpu.dot_dimension_numbers<[2], [1], [1], [2], [0, 0, 0, 1, 1, 2], [0], [0]>} : vector<1x16x16xbf16>, vector<1x16x128xbf16>, vector<1x16x128xf32> -> vector<1x16x128xf32>
    "tpu.trace_stop"() : () -> ()
    %28 = tpu.reciprocal %25 {approx = true} : vector<1x16x1xf32> -> vector<1x16x1xf32>
    %29 = vector.broadcast %28 : vector<1x16x1xf32> to vector<1x16x128xf32>
    %30 = arith.mulf %27, %29 : vector<1x16x128xf32>
    %c0_18 = arith.constant 0 : index
    %c0_19 = arith.constant 0 : index
    %c0_20 = arith.constant 0 : index
    %31 = vector.load %arg6[%c0_18, %c0_19, %c0_20] : memref<1x16x128xf32, #tpu.memory_space<vmem>>, vector<1x16x128xf32>
    tpu.vector_store %arg6[%c0_18, %c0_19, %c0_20], %30 {strides = array<i32>} : memref<1x16x128xf32, #tpu.memory_space<vmem>>, vector<1x16x128xf32>,
    return
  }
  func.func @transform_0(%arg0: i32) -> (i32, i32, i32) {
    %c0_i32 = arith.constant 0 : i32
    %c0_i32_0 = arith.constant 0 : i32
    %c0_i32_1 = arith.constant 0 : i32
    return %arg0, %c0_i32, %c0_i32_0 : i32, i32, i32
  }
  func.func @transform_1(%arg0: i32) -> (i32, i32, i32) {
    %c0_i32 = arith.constant 0 : i32
    %c0_i32_0 = arith.constant 0 : i32
    %c0_i32_1 = arith.constant 0 : i32
    return %arg0, %c0_i32, %c0_i32_0 : i32, i32, i32
  }
  func.func @transform_2(%arg0: i32) -> (i32, i32) {
    %c0_i32 = arith.constant 0 : i32
    %c0_i32_0 = arith.constant 0 : i32
    %c0_i32_1 = arith.constant 0 : i32
    return %c0_i32, %c0_i32_0 : i32, i32
  }
  func.func @transform_3(%arg0: i32) -> (i32, i32) {
    %c0_i32 = arith.constant 0 : i32
    %c0_i32_0 = arith.constant 0 : i32
    %c0_i32_1 = arith.constant 0 : i32
    return %c0_i32, %c0_i32_0 : i32, i32
  }
  func.func @transform_4(%arg0: i32) -> (i32, i32) {
    %c0_i32 = arith.constant 0 : i32
    %c0_i32_0 = arith.constant 0 : i32
    %c0_i32_1 = arith.constant 0 : i32
    return %c0_i32, %c0_i32_0 : i32, i32
  }
  func.func @transform_5(%arg0: i32) -> (i32, i32, i32) {
    %c0_i32 = arith.constant 0 : i32
    %c0_i32_0 = arith.constant 0 : i32
    %c0_i32_1 = arith.constant 0 : i32
    return %arg0, %c0_i32, %c0_i32_0 : i32, i32, i32
  }
}

</mosaic_0001>

<bundles_post_ra>
// kernel: tpu_custom_call.1
= control target key start
LH: loop header
LB: loop body
LE: loop exit
PB: predicated region body
PF: predicated region fallthrough
CT: control target
= control target key end

     0   :  { %s1822_s0 = inlined_call_operand.hbm [shape: bf16[2,16,128], index: 0, kind: input, shape index: {}]   ;;  %s1823_s1 = inlined_call_operand.hbm [shape: bf16[2,16,128], index: 1, kind: input, shape index: {}]   ;;  %s1824_s2 = inlined_call_operand.hbm [shape: bf16[128,128], index: 2, kind: input, shape index: {}]   ;;  %s1825_s3 = inlined_call_operand.hbm [shape: bf16[128,128], index: 3, kind: input, shape index: {}]   ;;  %s1826_s4 = inlined_call_operand.hbm [shape: bf16[128,128], index: 4, kind: input, shape index: {}]   ;;  %s1827_s5 = inlined_call_operand.hbm [shape: f32[2,16,128], index: 5, kind: output, shape index: {}]  }
   0x1   :  { %1835 = sst [smem:[#allocation17_spill]] %s1822_s0 }
   0x2   :  { %1836 = sst [smem:[#allocation18_spill]] %s1824_s2 }
   0x3   :  { %1837 = sst [smem:[#allocation19_spill]] %s1825_s3 }
   0x4   :  { %1838 = sst [smem:[#allocation20_spill]] %s1826_s4 }
   0x5   :  { %10 = vsyncpa [#allocation3], 0 }
   0x6   :  { %12 = vsyncpa [#allocation3 + $0x1], 0 }
   0x7   :  { %13 = vsyncpa [#allocation6], 0 }
   0x8   :  { %15 = vsyncpa [#allocation6 + $0x1], 0 }
   0x9   :  { %16 = vsyncpa [#allocation9], 0 }
   0xa   :  { %17 = vsyncpa [#allocation4], 0 }
   0xb   :  { %19 = vsyncpa [#allocation4 + $0x1], 0  ;;  %s1457_s18 = smov 0   ;;  %s1459_s19 = smov 0  }
   0xc   :  { %s1461_s20 = smov 0   ;;  %s1463_s21 = smov 0  }
   0xd LB: > { %s1478_s22 = sadd.s32 4294967295, %s1413_s21   ;;  %s912_s23 = sadd.s32 4294967294, %s1413_s21   ;;  %s1413_s21 = sphi %s1463_s21, %s1864_s21   ;;  %s1409_s20 = sphi %s1461_s20, %s1863_s20   ;;  %s1405_s19 = sphi %s1459_s19, %s1862_s19   ;;  %s1401_s18 = sphi %s1457_s18, %s1861_s18  }
   0xe   : > { %p45_p0 = scmp.ne.s32.totalorder %s1405_s19, %s1401_s18  ;;  %p1828_p1 = scmp.eq.s32.totalorder %s1478_s22, 0 }
   0xf   : > { %p164_p3 = scmp.eq.s32.totalorder %s912_s23, 1  ;;  %p913_p5 = scmp.ge.s32.totalorder %s1413_s21, 1 }
  0x10   : > { %p1487_p4 = por %p1828_p1, %p45_p0  ;;  %p171_p7 = scmp.lt.s32.totalorder %s1413_s21, 3 }
  0x11   : > { %p1492_p6 = por %p164_p3, %p45_p0  ;;  %s1415_s27 = smov [#allocation7]  }
  0x12   : > { %s1839_s24 = scalar_select %p1487_p4, 1, 0 }
  0x13   : > { %s1840_s25 = scalar_select %p1492_p6, 1, 0 }
  0x14   : > { %p1497_p8 = pnand %p913_p5, %p171_p7  ;;  %s183_s28 = sshll.u32 %s1415_s27, 4  ;;  %s1501_s28 = int_to_ptr.vmem [resolvable:$true] %s183_s28 }
  0x15   : > { %s1416_s30 = smov [#allocation8]   ;;  %s1417_s7 = smov [#allocation10]  }
  0x16   : > { %s1841_s26 = scalar_select %p1497_p8, 1, 0 }
  0x17   : > { %p1087_p9 = pneg %p1497_p8  ;;  %s196_s6 = sshll.u32 %s1416_s30, 4  ;;  %s1512_s6 = int_to_ptr.vmem [resolvable:$true] %s196_s6 }
  0x18   : > { %s1514_s8 = sshll.u32 %s1417_s7, 4  ;;  %s1843_s2 = sld [smem:[#allocation18_spill]]  ;;  %s210_s8 = int_to_ptr.vmem [resolvable:$true] %s1514_s8 }
  0x19   : > { %p1508_p11 = pnand %p1087_p9, %p1828_p1 }
  0x1b   : > { %p1524_p13 = pneg %p1508_p11 }
  0x1e   : > { %s1191_s11 = scalar_lea.hbm %s1843_s2, 1024 }
  0x1f   : > { %p1192_p12 = scmp.ne.s32.totalorder %s1843_s2, %s1191_s11  ;;  %p1198_p5 = scmp.lt.u32.totalorder %s1191_s11, %s1843_s2 }
  0x21   : > { %p1194_p0 = pnand %p1524_p13, %p1192_p12 }
  0x23   : > { %p1195_p3 = pneg %p1194_p0 }
  0x25   : > { %p1200_p7 = pnand %p1198_p5, %p1195_p3 }
  0x27   : > { %1203 = shalt.err (!%p1200_p7)
}
  0x28   : > { %s1204_s17 = scalar_lea.vmem %s1501_s28, 1024  ;;  %p1212_p2 = scmp.lt.s32.totalorder %s1501_s28, %s1501_s28 }
  0x29   : > { %p1205_p9 = scmp.ne.s32.totalorder %s1501_s28, %s1204_s17  ;;  %p1213_p6 = scmp.lt.s32.totalorder %s1204_s17, %s1204_s17 }
  0x2b   : > { %p1207_p10 = pnand %p1205_p9, %p1524_p13  ;;  %p1214_p12 = por %p1213_p6, %p1212_p2 }
  0x2d   : > { %p1208_p1 = pneg %p1207_p10 }
  0x2f   : > { %p1215_p0 = pnand %p1214_p12, %p1208_p1 }
  0x31   : > { %1218 = shalt.err (!%p1215_p0)
}
  0x32   : > { %s1831_s23 = smov 64   ;;  %s1833_s27 = smov 4  }
  0x33   : > { %1090 = dma.hbm_to_vmem [thread:$0]  (!%p1508_p11), %s1843_s2, 1024, %s1501_s28, [#allocation6], %s1831_s23, %s1831_s23, %s1833_s27  }
  0x34   : > { %s1845_s3 = sld [smem:[#allocation19_spill]] }
  0x3a   : > { %s1219_s11 = scalar_lea.hbm %s1845_s3, 1024 }
  0x3b   : > { %p1220_p1 = scmp.ne.s32.totalorder %s1845_s3, %s1219_s11  ;;  %p1226_p10 = scmp.lt.u32.totalorder %s1219_s11, %s1845_s3 }
  0x3d   : > { %p1222_p2 = pnand %p1220_p1, %p1524_p13 }
  0x3f   : > { %p1223_p6 = pneg %p1222_p2 }
  0x41   : > { %p1228_p3 = pnand %p1226_p10, %p1223_p6 }
  0x43   : > { %1231 = shalt.err (!%p1228_p3)
}
  0x44   : > { %s1232_s28 = scalar_lea.vmem %s1512_s6, 1024  ;;  %p1240_p12 = scmp.lt.s32.totalorder %s1512_s6, %s1512_s6 }
  0x45   : > { %p1233_p5 = scmp.ne.s32.totalorder %s1512_s6, %s1232_s28  ;;  %p1241_p0 = scmp.lt.s32.totalorder %s1232_s28, %s1232_s28 }
  0x47   : > { %p1235_p7 = pnand %p1233_p5, %p1524_p13  ;;  %p1242_p1 = por %p1241_p0, %p1240_p12 }
  0x49   : > { %p1236_p9 = pneg %p1235_p7 }
  0x4b   : > { %p1243_p2 = pnand %p1242_p1, %p1236_p9 }
  0x4d   : > { %1246 = shalt.err (!%p1243_p2)
}
  0x4e   : > { %1093 = dma.hbm_to_vmem [thread:$0]  (!%p1508_p11), %s1845_s3, 1024, %s1512_s6, [#allocation9], %s1831_s23, %s1831_s23, %s1833_s27  }
  0x4f   : > { %s1846_s4 = sld [smem:[#allocation20_spill]] }
  0x55   : > { %s1247_s10 = scalar_lea.hbm %s1846_s4, 1024 }
  0x56   : > { %p1248_p6 = scmp.ne.s32.totalorder %s1846_s4, %s1247_s10  ;;  %p1254_p5 = scmp.lt.u32.totalorder %s1247_s10, %s1846_s4 }
  0x58   : > { %p1250_p10 = pnand %p1248_p6, %p1524_p13 }
  0x5a   : > { %p1251_p3 = pneg %p1250_p10 }
  0x5c   : > { %p1256_p7 = pnand %p1254_p5, %p1251_p3 }
  0x5e   : > { %1259 = shalt.err (!%p1256_p7)
}
  0x5f   : > { %s1260_s16 = scalar_lea.vmem %s210_s8, 1024  ;;  %p1268_p1 = scmp.lt.s32.totalorder %s210_s8, %s210_s8 }
  0x60   : > { %p1261_p9 = scmp.ne.s32.totalorder %s210_s8, %s1260_s16  ;;  %p1269_p2 = scmp.lt.s32.totalorder %s1260_s16, %s1260_s16 }
  0x62   : > { %p1263_p12 = pnand %p1261_p9, %p1524_p13  ;;  %p1270_p4 = por %p1269_p2, %p1268_p1 }
  0x64   : > { %p1264_p0 = pneg %p1263_p12 }
  0x66   : > { %p1271_p8 = pnand %p1270_p4, %p1264_p0 }
  0x68   : > { %1274 = shalt.err (!%p1271_p8)
}
  0x69   : > { %1096 = dma.hbm_to_vmem [thread:$0]  (!%p1508_p11), %s1846_s4, 1024, %s210_s8, [#allocation9], %s1831_s23, %s1831_s23, %s1833_s27  }
  0x6a   : > { %s1597_s14 = sadd.s32 1, %s1413_s21   ;;  %s32_s17 = sadd.s32 1, %s1409_s20 }
  0x6b   : > { %s29_s29 = ssub.s32 %s1413_s21, %s1597_s14  ;;  %p39_p8 = scmp.ne.s32.totalorder %s1409_s20, %s1405_s19 }
  0x6c   : > { %p30_p4 = scmp.eq.s32.totalorder %s29_s29, 0  ;;  %p40_p13 = scmp.eq.s32.totalorder %s1413_s21, 0 }
  0x6d   : > { %p1111_p6 = scmp.lt.s32.totalorder %s1413_s21, 2  ;;  %p1847_p3 = scmp.eq.s32.totalorder %s1478_s22, 1 }
  0x6e   : > { %s1607_s30 = scalar_select %p30_p4, %s1409_s20, %s32_s17  }
  0x6f   : > { %p41_p10 = por %p40_p13, %p39_p8  ;;  %p1611_p5 = por %p1847_p3, %p39_p8 }
  0x70   : > { %s223_s9 = sand.u32 1, %s1409_s20   ;;  %s963_s10 = sshll.u32 %s1413_s21, 7 }
  0x71   : > { %s1617_s8 = sshll.u32 %s223_s9, 3  ;;  %s1849_s0 = sld [smem:[#allocation17_spill]] }
  0x72   : > { %s227_s15 = scalar_lea.vmem [#allocation2], %s1617_s8  ;;  %p1625_p11 = pnand %p1111_p6, %p41_p10 }
  0x73   : > { %s234_s16 = sshll.u32 %s227_s15, 4  ;;  %s1634_s17 = scalar_lea.hbm %s1823_s1, %s963_s10  ;;  %s1629_s16 = int_to_ptr.vmem [resolvable:$true] %s234_s16 }
  0x74   : > { %s1636_s11 = scalar_lea.sflag [#allocation3], %s223_s9  ;;  %p1277_p9 = pneg %p1625_p11 }
  0x77   : > { %s1622_s13 = scalar_lea.hbm %s1849_s0, %s963_s10  ;;  %s1280_s27 = scalar_lea.hbm %s1849_s0, 256 }
  0x78   : > { %s1275_s12 = scalar_lea.hbm %s1622_s13, 128  ;;  %p1281_p1 = scmp.lt.u32.totalorder %s1622_s13, %s1849_s0 }
  0x79   : > { %p1276_p7 = scmp.ne.s32.totalorder %s1622_s13, %s1275_s12  ;;  %p1282_p2 = scmp.lt.u32.totalorder %s1280_s27, %s1275_s12 }
  0x7a   : > { %p1284_p8 = scmp.lt.u32.totalorder %s1275_s12, %s1622_s13 }
  0x7b   : > { %p1278_p12 = pnand %p1277_p9, %p1276_p7  ;;  %p1283_p4 = por %p1282_p2, %p1281_p1 }
  0x7d   : > { %p1279_p0 = pneg %p1278_p12  ;;  %p1285_p13 = por %p1284_p8, %p1283_p4 }
  0x7f   : > { %p1286_p6 = pnand %p1285_p13, %p1279_p0 }
  0x81   : > { %1289 = shalt.err (!%p1286_p6)
}
  0x82   : > { %s1290_s9 = scalar_lea.vmem %s1629_s16, 128  ;;  %s1420_s23 = smov [#allocation2]  }
  0x83   : > { %p1291_p10 = scmp.ne.s32.totalorder %s1629_s16, %s1290_s9  ;;  %s1295_s10 = sshll.u32 %s1420_s23, 4  ;;  %s1296_s10 = int_to_ptr.vmem [resolvable:$false] %s1295_s10 }
  0x84   : > { %s1297_s2 = scalar_lea.vmem %s1296_s10, 256  ;;  %p1298_p12 = scmp.lt.s32.totalorder %s1629_s16, %s1296_s10 }
  0x85   : > { %p1293_p3 = pnand %p1291_p10, %p1277_p9  ;;  %p1299_p1 = scmp.lt.s32.totalorder %s1297_s2, %s1290_s9 }
  0x87   : > { %p1294_p7 = pneg %p1293_p3  ;;  %p1300_p2 = por %p1299_p1, %p1298_p12 }
  0x89   : > { %p1301_p4 = pnand %p1300_p2, %p1294_p7 }
  0x8b   : > { %1304 = shalt.err (!%p1301_p4)
}
  0x8c   : > { %s1851_s3 = smov 4   ;;  %s1852_s27 = smov 64  }
  0x8d   : > { %1100 = dma.hbm_to_vmem [thread:$0]  (!%p1625_p11), %s1622_s13, 128, %s1629_s16, %s1636_s11, %s1852_s27, %s1852_s27, %s1851_s3  }
  0x8e   : > { %s248_s28 = scalar_lea.vmem [#allocation5], %s1617_s8  ;;  %s244_s12 = sand.u32 1, %s1413_s21  }
  0x8f   : > { %s255_s29 = sshll.u32 %s248_s28, 4  ;;  %s1671_s15 = scalar_lea.sflag [#allocation6], %s244_s12  ;;  %s1669_s29 = int_to_ptr.vmem [resolvable:$true] %s255_s29 }
  0x90   : > { %s1305_s9 = scalar_lea.hbm %s1634_s17, 128  ;;  %s1310_s2 = scalar_lea.hbm %s1823_s1, 256 }
  0x91   : > { %p1306_p0 = scmp.ne.s32.totalorder %s1634_s17, %s1305_s9  ;;  %p1311_p6 = scmp.lt.u32.totalorder %s1634_s17, %s1823_s1 }
  0x92   : > { %p1312_p10 = scmp.lt.u32.totalorder %s1310_s2, %s1305_s9  ;;  %p1314_p7 = scmp.lt.u32.totalorder %s1305_s9, %s1634_s17 }
  0x93   : > { %p1308_p8 = pnand %p1306_p0, %p1277_p9 }
  0x94   : > { %p1313_p3 = por %p1312_p10, %p1311_p6 }
  0x95   : > { %p1309_p13 = pneg %p1308_p8 }
  0x96   : > { %p1315_p12 = por %p1314_p7, %p1313_p3 }
  0x98   : > { %p1316_p1 = pnand %p1315_p12, %p1309_p13 }
  0x9a   : > { %1319 = shalt.err (!%p1316_p1)
}
  0x9b   : > { %s1320_s8 = scalar_lea.vmem %s1669_s29, 128  ;;  %s1421_s13 = smov [#allocation5]  }
  0x9c   : > { %p1321_p2 = scmp.ne.s32.totalorder %s1669_s29, %s1320_s8  ;;  %s1325_s16 = sshll.u32 %s1421_s13, 4  ;;  %s1326_s16 = int_to_ptr.vmem [resolvable:$false] %s1325_s16 }
  0x9d   : > { %s1327_s0 = scalar_lea.vmem %s1326_s16, 256  ;;  %p1328_p8 = scmp.lt.s32.totalorder %s1669_s29, %s1326_s16 }
  0x9e   : > { %p1323_p4 = pnand %p1321_p2, %p1277_p9  ;;  %p1329_p6 = scmp.lt.s32.totalorder %s1327_s0, %s1320_s8 }
  0xa0   : > { %p1324_p0 = pneg %p1323_p4  ;;  %p1330_p10 = por %p1329_p6, %p1328_p8 }
  0xa2   : > { %p1331_p3 = pnand %p1330_p10, %p1324_p0 }
  0xa4   : > { %1334 = shalt.err (!%p1331_p3)
}
  0xa5   : > { %1103 = dma.hbm_to_vmem [thread:$0]  (!%p1625_p11), %s1634_s17, 128, %s1669_s29, %s1671_s15, %s1852_s27, %s1852_s27, %s1851_s3  }
  0xa6   : > { %p1853_p9 = scmp.ne.s32.totalorder %s1841_s26, 0 }
  0xa7   : > { %s1703_s4 = sand.u32 (!%p1853_p9), 1, %s1405_s19   ;;  %p1854_p13 = scmp.ne.s32.totalorder (!%p1853_p9), %s1839_s24, 0 }
  0xa8   : > { %267 = sbr.rel (%p1853_p9) target bundleno = 1050 (0x41a), region = 40  ;;  %s925_s11 = sshll.u32 (!%p1853_p9), %s1703_s4, 3 }
  0xa9   : > { %s270_s28 = scalar_lea.sflag (!%p1853_p9), [#allocation3], %s1703_s4  ;;  %s1707_s12 = scalar_lea.vmem (!%p1853_p9), [#allocation2], %s925_s11 }
  0xaf   : > { %1380 = dma.done.wait (%p1854_p13), %s270_s28, 128  }
  0xb0   : > { %1382 = vsyncadd (%p1854_p13), %s270_s28, 4294967168  ;;  %s278_s6 = sand.u32 1, %s1478_s22   ;;  %s1714_s17 = scalar_lea.vmem [#allocation5], %s925_s11 }
  0xb1   : > { %s279_s26 = scalar_lea.sflag [#allocation6], %s278_s6 }
  0xb2   : > { %1384 = dma.done.wait (%p1854_p13), %s279_s26, 128  }
  0xb3   : > { %1386 = vsyncadd (%p1854_p13), %s279_s26, 4294967168  ;;  %p1855_p11 = scmp.eq.s32.totalorder %s1478_s22, 0 }
  0xb5   : > { %1388 = dma.done.wait (%p1855_p11), [#allocation6], 1024   ;;  %p1856_p7 = pmov %p1855_p11 }
  0xb7   : > { %1390 = vsyncadd (%p1856_p7), [#allocation6], 4294966272  ;;  %p1857_p12 = pmov %p1856_p7 }
  0xb8   : > { %p1858_p1 = pmov %p1856_p7 }
  0xb9   : > { %1392 = dma.done.wait (%p1857_p12), [#allocation9], 2048  }
  0xba   : > { %1394 = vsyncadd (%p1858_p1), [#allocation9], 4294965248  ;;  %v1422_v0 = vmov 0.0   ;;  %vm1423_vm0 = vmmov 0   ;;  %v1157_v1 = vld [vmem:[#allocation8] sm:$0xff]   ;;  %v1159_v3 = vld [vmem:[#allocation8 + $0x8] sm:$0xff]  }
  0xbb   : > { %1017 = vmatprep.subr.bf16.mxu1 %v1422_v0  ;;  %997 = vmatprep.subr.bf16.mxu0 %v1422_v0  ;;  %v1158_v2 = vld [vmem:[#allocation7] sm:$0xff]   ;;  %v1160_v4 = vld [vmem:[#allocation7 + $0x8] sm:$0xff]   ;;  %v1161_v5 = vld [vmem:[#allocation8 + $0x10] sm:$0xff]   ;;  %vm704_vm1 = vcmask 130048   ;;  %s930_s24 = sshll.u32 %s1703_s4, 4  ;;  %s965_s29 = sshll.u32 %s1478_s22, 8 }
  0xbc   : > { %1033 = vmatprep.mubr.msk.bf16.mxu1 %vm1423_vm0, %v1422_v0  ;;  %1013 = vmatprep.mubr.msk.bf16.mxu0 %vm1423_vm0, %v1422_v0  ;;  %v1162_v6 = vld [vmem:[#allocation7 + $0x10] sm:$0xff]   ;;  %v1163_v7 = vld [vmem:[#allocation8 + $0x18] sm:$0xff]   ;;  %v1165_v9 = vld [vmem:[#allocation8 + $0x20] sm:$0xff]   ;;  %s325_s3 = scalar_lea.vmem [#allocation11], %s930_s24  ;;  %s1778_s23 = scalar_lea.hbm %s1827_s5, %s965_s29 }
  0xbd   : > { %1018 = vmatpush3.bf16.msra.mxu1 %v1157_v1  ;;  %998 = vmatpush3.bf16.msra.mxu0 %v1158_v2  ;;  %v1164_v8 = vld [vmem:[#allocation7 + $0x18] sm:$0xff]   ;;  %v1166_v10 = vld [vmem:[#allocation7 + $0x20] sm:$0xff]   ;;  %v1167_v11 = vld [vmem:[#allocation8 + $0x28] sm:$0xff]   ;;  %s788_s27 = sshll.u32 %s325_s3, 4  ;;  %s775_s22 = scalar_lea.sflag [#allocation4], %s1703_s4  ;;  %s1773_s27 = int_to_ptr.vmem [resolvable:$true] %s788_s27 }
  0xbe   : > { %1019 = vmatprep.subr.bf16.mxu1 %v1422_v0  ;;  %999 = vmatprep.subr.bf16.mxu0 %v1422_v0  ;;  %v1168_v12 = vld [vmem:[#allocation7 + $0x28] sm:$0xff]   ;;  %v1169_v13 = vld [vmem:[#allocation8 + $0x30] sm:$0xff]   ;;  %v1171_v15 = vld [vmem:[#allocation8 + $0x38] sm:$0xff]   ;;  %s1335_s10 = scalar_lea.vmem %s1773_s27, 256  ;;  %s1424_s2 = smov [#allocation11]  }
  0xbf   : > { %v1170_v14 = vld [vmem:[#allocation7 + $0x30] sm:$0xff]   ;;  %v1172_v16 = vld [vmem:[#allocation7 + $0x38] sm:$0xff]   ;;  %v1174_v18 = vld [vmem:[%s1707_s12] sm:$0xff]   ;;  %p1336_p2 = scmp.ne.s32.totalorder %s1773_s27, %s1335_s10  ;;  %s1339_s8 = sshll.u32 %s1424_s2, 4  ;;  %s1340_s8 = int_to_ptr.vmem [resolvable:$false] %s1339_s8 }
  0xc0   : > { %v1173_v17 = vld [vmem:[%s1714_s17] sm:$0xff]   ;;  %v1175_v19 = vld [vmem:[#allocation10] sm:$0xff]   ;;  %v1176_v20 = vld [vmem:[#allocation10 + $0x8] sm:$0xff]   ;;  %s1341_s13 = scalar_lea.vmem %s1340_s8, 512  ;;  %p1342_p8 = scmp.lt.s32.totalorder %s1773_s27, %s1340_s8 }
  0xc1   : > { %1020 = vmatpush3.bf16.msra.mxu1 %v1159_v3  ;;  %1000 = vmatpush3.bf16.msra.mxu0 %v1160_v4  ;;  %v1177_v21 = vld [vmem:[#allocation10 + $0x10] sm:$0xff]   ;;  %v1178_v22 = vld [vmem:[#allocation10 + $0x18] sm:$0xff]   ;;  %v1179_v23 = vld [vmem:[#allocation10 + $0x20] sm:$0xff]   ;;  %p1337_p4 = pnand %p1336_p2, %p1611_p5  ;;  %p1343_p6 = scmp.lt.s32.totalorder %s1341_s13, %s1335_s10 }
  0xc2   : > { %1021 = vmatprep.subr.bf16.mxu1 %v1422_v0  ;;  %1001 = vmatprep.subr.bf16.mxu0 %v1422_v0  ;;  %v1180_v24 = vld [vmem:[#allocation10 + $0x28] sm:$0xff]   ;;  %v1181_v25 = vld [vmem:[#allocation10 + $0x30] sm:$0xff]   ;;  %v1182_v26 = vld [vmem:[#allocation10 + $0x38] sm:$0xff]  }
  0xc3   : > { %p1338_p0 = pneg %p1337_p4  ;;  %p1344_p10 = por %p1343_p6, %p1342_p8 }
  0xc5   : > { %1022 = vmatpush3.bf16.msra.mxu1 %v1161_v5  ;;  %1002 = vmatpush3.bf16.msra.mxu0 %v1162_v6  ;;  %p1345_p3 = pnand %p1344_p10, %p1338_p0 }
  0xc6   : > { %1023 = vmatprep.subr.bf16.mxu1 %v1422_v0  ;;  %1003 = vmatprep.subr.bf16.mxu0 %v1422_v0 }
  0xc9   : > { %1024 = vmatpush3.bf16.msra.mxu1 %v1163_v7  ;;  %1004 = vmatpush3.bf16.msra.mxu0 %v1164_v8 }
  0xca   : > { %1025 = vmatprep.subr.bf16.mxu1 %v1422_v0  ;;  %1005 = vmatprep.subr.bf16.mxu0 %v1422_v0 }
  0xcd   : > { %1026 = vmatpush3.bf16.msra.mxu1 %v1165_v9  ;;  %1006 = vmatpush3.bf16.msra.mxu0 %v1166_v10 }
  0xce   : > { %1027 = vmatprep.subr.bf16.mxu1 %v1422_v0  ;;  %1007 = vmatprep.subr.bf16.mxu0 %v1422_v0 }
  0xd1   : > { %1028 = vmatpush3.bf16.msra.mxu1 %v1167_v11  ;;  %1008 = vmatpush3.bf16.msra.mxu0 %v1168_v12 }
  0xd2   : > { %1029 = vmatprep.subr.bf16.mxu1 %v1422_v0  ;;  %1009 = vmatprep.subr.bf16.mxu0 %v1422_v0 }
  0xd5   : > { %1030 = vmatpush3.bf16.msra.mxu1 %v1169_v13  ;;  %1010 = vmatpush3.bf16.msra.mxu0 %v1170_v14 }
  0xd6   : > { %1031 = vmatprep.subr.bf16.mxu1 %v1422_v0  ;;  %1011 = vmatprep.subr.bf16.mxu0 %v1422_v0 }
  0xd9   : > { %1032 = vmatpush3.bf16.msra.mxu1 %v1171_v15  ;;  %1012 = vmatpush3.bf16.msra.mxu0 %v1172_v16 }
  0xda   : > { %1057 = vmatprep.subr.bf16.mxu1 %v1422_v0  ;;  %1037 = vmatprep.subr.bf16.mxu0 %v1422_v0 }
  0xdc   : > { %1034 = vmatmul.mubr.bf16.vlgmr.msra.gmra.mrb[0].mxu1 %v1173_v17  ;;  %1014 = vmatmul.mubr.bf16.vlgmr.msra.gmra.mrb[0].mxu0 %v1174_v18 }
  0xdd   : > { %1059 = vmatprep.mubr.msk.bf16.mxu1 %vm1423_vm0, %v1422_v0  ;;  %1053 = vmatprep.mubr.msk.bf16.mxu0 %vm1423_vm0, %v1422_v0 }
  0xde   : > { %1038 = vmatpush3.bf16.msra.mxu0 %v1175_v19 }
  0xdf   : > { %1039 = vmatprep.subr.bf16.mxu0 %v1422_v0 }
  0xe2   : > { %1040 = vmatpush3.bf16.msra.mxu0 %v1176_v20 }
  0xe3   : > { %1041 = vmatprep.subr.bf16.mxu0 %v1422_v0 }
  0xe6   : > { %1042 = vmatpush3.bf16.msra.mxu0 %v1177_v21 }
  0xe7   : > { %1043 = vmatprep.subr.bf16.mxu0 %v1422_v0 }
  0xea   : > { %1044 = vmatpush3.bf16.msra.mxu0 %v1178_v22 }
  0xeb   : > { %1045 = vmatprep.subr.bf16.mxu0 %v1422_v0 }
  0xee   : > { %1046 = vmatpush3.bf16.msra.mxu0 %v1179_v23 }
  0xef   : > { %1047 = vmatprep.subr.bf16.mxu0 %v1422_v0 }
  0xf2   : > { %1048 = vmatpush3.bf16.msra.mxu0 %v1180_v24 }
  0xf3   : > { %1049 = vmatprep.subr.bf16.mxu0 %v1422_v0 }
  0xf6   : > { %1050 = vmatpush3.bf16.msra.mxu0 %v1181_v25 }
  0xf7   : > { %1051 = vmatprep.subr.bf16.mxu0 %v1422_v0 }
  0xfa   : > { %1052 = vmatpush3.bf16.msra.mxu0 %v1182_v26 }
  0xfd   : > { %1054 = vmatmul.mubr.bf16.vlgmr.msra.gmra.mrb[4].mxu0 %v1173_v17 }
 0x1af   : > { %v546_v27 = vpop.f32.mrb[0].mxu1  ;;  %v435_v29 = vpop.f32.mrb[0].mxu0 }
 0x1b0   : > { %v1035_v28 = vpop.f32.mrb[1].mxu1  ;;  %v658_v31 = vmul.f32 0.17677669, %v435_v29  ;;  %v1015_v32 = vpop.f32.mrb[1].mxu0 }
 0x1b1   : > { %v549_v30 = vpop.f32.mrb[2].mxu1  ;;  %v438_v35 = vpop.f32.mrb[2].mxu0 }
 0x1b2   : > { %v661_v33 = vpack.c.bf16 %v549_v30, %v546_v27  ;;  %v1036_v34 = vpop.f32.mrb[3].mxu1  ;;  %v659_v36 = vmul.f32 0.17677669, %v438_v35  ;;  %v1016_v37 = vpop.f32.mrb[3].mxu0 }
 0x1b4   : > { %1058 = vmatpush3.bf16.xpose.msra.mxu1 %v661_v33  ;;  %v660_v38 = vpack.c.bf16 %v659_v36, %v658_v31 }
 0x1b5   : > { %1063 = vmatprep.subr.bf16.mxu1 %v1422_v0 }
 0x1bb   : > { %1060 = vmatmul.mubr.bf16.vlgmr.msra.gmra.mrb[4].mxu1 %v660_v38 }
 0x1bc   : > { %1065 = vmatprep.mubr.msk.bf16.mxu1 %vm1423_vm0, %v1422_v0 }
 0x1d0   : > { %v651_v45 = vpop.f32.mrb[4].mxu0 }
 0x1d1   : > { %v1055_v46 = vpop.f32.mrb[5].mxu0 }
 0x1d2   : > { %v654_v47 = vpop.f32.mrb[6].mxu0 }
 0x1d3   : > { %v662_v48 = vpack.c.bf16 %v654_v47, %v651_v45  ;;  %v1056_v49 = vpop.f32.mrb[7].mxu0 }
 0x1d5   : > { %1064 = vmatpush3.bf16.msra.mxu1 %v662_v48 }
 0x28e   : > { %v697_v39 = vpop.f32.mrb[4].mxu1 }
 0x28f   : > { %v1061_v40 = vpop.f32.mrb[5].mxu1  ;;  %v705_v41 = vsel %vm704_vm1, %v697_v39, -inf }
 0x290   : > { %706 = vmax.xlane.f32.xlu0 %v705_v41  ;;  %v700_v42 = vpop.f32.mrb[6].mxu1 }
 0x291   : > { %v1062_v43 = vpop.f32.mrb[7].mxu1  ;;  %v708_v44 = vsel %vm704_vm1, %v700_v42, -inf }
 0x294   : > { %709 = vmax.xlane.f32.xlu0 %v708_v44 }
 0x31d   : > { %v707_v50 = vpop.xlane.xlu0 %706 }
 0x31e   : > { %v711_v51 = vsub.f32 %v697_v39, %v707_v50 }
 0x320   : > { %v713_v52 = vmul.f32 1.442695, %v711_v51 }
 0x321   : > { %v710_v53 = vpop.xlane.xlu0 %709 }
 0x322   : > { %1183 = vpow2.f32 %v713_v52  ;;  %v712_v54 = vsub.f32 %v700_v42, %v710_v53 }
 0x324   : > { %v715_v55 = vmul.f32 1.442695, %v712_v54 }
 0x326   : > { %1185 = vpow2.f32 %v715_v55 }
 0x32c   : > { %v1184_v56 = vpop.eup %1183 }
 0x32d   : > { %v717_v57 = vsel %vm704_vm1, %v1184_v56, 0.0 }
 0x32e   : > { %718 = vadd.xlane.f32.xlu1 %v717_v57 }
 0x330   : > { %v1186_v58 = vpop.eup %1185 }
 0x331   : > { %v720_v59 = vsel %vm704_vm1, %v1186_v58, 0.0  ;;  %v723_v60 = vpack.c.bf16 %v1186_v58, %v1184_v56 }
 0x332   : > { %721 = vadd.xlane.f32.xlu1 %v720_v59 }
 0x333   : > { %1066 = vmatmul.mubr.msk.bf16.vlgmr.msra.gmra.mrb[8].mxu1 %vm704_vm1, %v723_v60 }
 0x3bb   : > { %v719_v61 = vpop.xlane.xlu1 %718 }
 0x3bc   : > { %1187 = vrcp.f32 %v719_v61 }
 0x3bf   : > { %v722_v62 = vpop.xlane.xlu1 %721 }
 0x3c0   : > { %1189 = vrcp.f32 %v722_v62 }
 0x3c6   : > { %v1188_v63 = vpop.eup %1187 }
 0x3ca   : > { %v1190_v3 = vpop.eup %1189 }
 0x406   : > { %v761_v0 = vpop.f32.mrb[8].mxu1 }
 0x407   : > { %v770_v1 = vmul.f32 %v1188_v63, %v761_v0  ;;  %v1067_v2 = vpop.f32.mrb[9].mxu1 }
 0x408   : > { %v764_v4 = vpop.f32.mrb[10].mxu1 }
 0x409   : > { %772 = vst [vmem:[%s325_s3] sm:$0xff] %v770_v1  ;;  %v771_v5 = vmul.f32 %v1190_v3, %v764_v4  ;;  %v1068_v6 = vpop.f32.mrb[11].mxu1 }
 0x40b   : > { %773 = vst [vmem:[%s325_s3 + $0x8] sm:$0xff] %v771_v5 }
 0x40c   : > { %1348 = shalt.err (!%p1345_p3)
}
 0x40d   : > { %s1349_s16 = scalar_lea.hbm %s1778_s23, 256  ;;  %s1353_s28 = scalar_lea.hbm %s1827_s5, 512 }
 0x40e   : > { %p1350_p9 = scmp.ne.s32.totalorder %s1778_s23, %s1349_s16  ;;  %p1354_p7 = scmp.lt.u32.totalorder %s1778_s23, %s1827_s5 }
 0x40f   : > { %p1355_p12 = scmp.lt.u32.totalorder %s1353_s28, %s1349_s16  ;;  %p1357_p2 = scmp.lt.u32.totalorder %s1349_s16, %s1778_s23 }
 0x410   : > { %p1351_p13 = pnand %p1350_p9, %p1611_p5 }
 0x411   : > { %p1356_p1 = por %p1355_p12, %p1354_p7 }
 0x412   : > { %p1352_p11 = pneg %p1351_p13 }
 0x413   : > { %p1358_p4 = por %p1357_p2, %p1356_p1 }
 0x415   : > { %p1359_p0 = pnand %p1358_p4, %p1352_p11 }
 0x417   : > { %1362 = shalt.err (!%p1359_p0)
}
 0x418   : > { %s1425_s26 = smov 128   ;;  %s1426_s17 = smov 8  }
 0x419   : > { %1085 = dma.vmem_to_hbm [thread:$0]  (%p1611_p5), %s1773_s27, 256, %s1778_s23, %s775_s22, %s1425_s26, %s1425_s26, %s1426_s17  }
 0x41a PF: > { %s803_s24 = sand.u32 1, %s1401_s18   ;;  %p1859_p8 = scmp.ne.s32.totalorder %s1840_s25, 0 }
 0x41b   : > { %p1860_p6 = scmp.ge.s32.totalorder %s1413_s21, 2  ;;  %s804_s3 = scalar_lea.sflag [#allocation4], %s803_s24 }
 0x41d   : > { %p1105_p10 = pnand %p1860_p6, %p1859_p8 }
 0x41f   : > { %1396 = dma.done.wait (!%p1105_p10), %s804_s3, 256  }
 0x420   : > { %1398 = vsyncadd (!%p1105_p10), %s804_s3, 4294967040  ;;  %p22_p3 = scmp.ge.s32.totalorder %s1597_s14, 4   ;;  %s1861_s18 = smov %s1405_s19 }
 0x421   : > { %s1862_s19 = smov %s1409_s20  ;;  %s1863_s20 = smov %s1607_s30 }
 0x422   : > { %s1864_s21 = smov %s1597_s14  ;;  %24 = sbr.rel (!%p22_p3) target bundleno = 13 (0xd), region = 110 }
 0x429   :  { %809 = vsyncpa [#allocation3], 1 }
 0x42a   :  { %811 = vsyncpa [#allocation3 + $0x1], 1 }
 0x42b   :  { %812 = vsyncpa [#allocation6], 1 }
 0x42c   :  { %814 = vsyncpa [#allocation6 + $0x1], 1 }
 0x42d   :  { %815 = vsyncpa [#allocation9], 1 }
 0x42e   :  { %816 = vsyncpa [#allocation4], 1 }
 0x42f   :  { %818 = vsyncpa [#allocation4 + $0x1], 1 }

// kernel: tpu_custom_call.1
= control target key start
LH: loop header
LB: loop body
LE: loop exit
PB: predicated region body
PF: predicated region fallthrough
CT: control target
= control target key end

     0   :  { %s1822_s0 = inlined_call_operand.hbm [shape: bf16[2,16,128], index: 0, kind: input, shape index: {}]   ;;  %s1823_s1 = inlined_call_operand.hbm [shape: bf16[2,16,128], index: 1, kind: input, shape index: {}]   ;;  %s1824_s2 = inlined_call_operand.hbm [shape: bf16[128,128], index: 2, kind: input, shape index: {}]   ;;  %s1825_s3 = inlined_call_operand.hbm [shape: bf16[128,128], index: 3, kind: input, shape index: {}]   ;;  %s1826_s4 = inlined_call_operand.hbm [shape: bf16[128,128], index: 4, kind: input, shape index: {}]   ;;  %s1827_s5 = inlined_call_operand.hbm [shape: f32[2,16,128], index: 5, kind: output, shape index: {}]  }
   0x1   :  { %1835 = sst [smem:[#allocation17_spill]] %s1822_s0 }
   0x2   :  { %1836 = sst [smem:[#allocation18_spill]] %s1824_s2 }
   0x3   :  { %1837 = sst [smem:[#allocation19_spill]] %s1825_s3 }
   0x4   :  { %1838 = sst [smem:[#allocation20_spill]] %s1826_s4 }
   0x5   :  { %10 = vsyncpa [#allocation3], 0 }
   0x6   :  { %12 = vsyncpa [#allocation3 + $0x1], 0 }
   0x7   :  { %13 = vsyncpa [#allocation6], 0 }
   0x8   :  { %15 = vsyncpa [#allocation6 + $0x1], 0 }
   0x9   :  { %16 = vsyncpa [#allocation9], 0 }
   0xa   :  { %17 = vsyncpa [#allocation4], 0 }
   0xb   :  { %19 = vsyncpa [#allocation4 + $0x1], 0  ;;  %s1457_s18 = smov 0   ;;  %s1459_s19 = smov 0  }
   0xc   :  { %s1461_s20 = smov 0   ;;  %s1463_s21 = smov 0  }
   0xd LB: > { %s1478_s22 = sadd.s32 4294967295, %s1413_s21   ;;  %s912_s23 = sadd.s32 4294967294, %s1413_s21   ;;  %s1413_s21 = sphi %s1463_s21, %s1864_s21   ;;  %s1409_s20 = sphi %s1461_s20, %s1863_s20   ;;  %s1405_s19 = sphi %s1459_s19, %s1862_s19   ;;  %s1401_s18 = sphi %s1457_s18, %s1861_s18  }
   0xe   : > { %p45_p0 = scmp.ne.s32.totalorder %s1405_s19, %s1401_s18  ;;  %p1828_p1 = scmp.eq.s32.totalorder %s1478_s22, 0 }
   0xf   : > { %p164_p3 = scmp.eq.s32.totalorder %s912_s23, 1  ;;  %p913_p5 = scmp.ge.s32.totalorder %s1413_s21, 1 }
  0x10   : > { %p1487_p4 = por %p1828_p1, %p45_p0  ;;  %p171_p7 = scmp.lt.s32.totalorder %s1413_s21, 3 }
  0x11   : > { %p1492_p6 = por %p164_p3, %p45_p0  ;;  %s1415_s27 = smov [#allocation7]  }
  0x12   : > { %s1839_s24 = scalar_select %p1487_p4, 1, 0 }
  0x13   : > { %s1840_s25 = scalar_select %p1492_p6, 1, 0 }
  0x14   : > { %p1497_p8 = pnand %p913_p5, %p171_p7  ;;  %s183_s28 = sshll.u32 %s1415_s27, 4  ;;  %s1501_s28 = int_to_ptr.vmem [resolvable:$true] %s183_s28 }
  0x15   : > { %s1416_s30 = smov [#allocation8]   ;;  %s1417_s7 = smov [#allocation10]  }
  0x16   : > { %s1841_s26 = scalar_select %p1497_p8, 1, 0 }
  0x17   : > { %p1087_p9 = pneg %p1497_p8  ;;  %s196_s6 = sshll.u32 %s1416_s30, 4  ;;  %s1512_s6 = int_to_ptr.vmem [resolvable:$true] %s196_s6 }
  0x18   : > { %s1514_s8 = sshll.u32 %s1417_s7, 4  ;;  %s1843_s2 = sld [smem:[#allocation18_spill]]  ;;  %s210_s8 = int_to_ptr.vmem [resolvable:$true] %s1514_s8 }
  0x19   : > { %p1508_p11 = pnand %p1087_p9, %p1828_p1 }
  0x1b   : > { %p1524_p13 = pneg %p1508_p11 }
  0x1e   : > { %s1191_s11 = scalar_lea.hbm %s1843_s2, 1024 }
  0x1f   : > { %p1192_p12 = scmp.ne.s32.totalorder %s1843_s2, %s1191_s11  ;;  %p1198_p5 = scmp.lt.u32.totalorder %s1191_s11, %s1843_s2 }
  0x21   : > { %p1194_p0 = pnand %p1524_p13, %p1192_p12 }
  0x23   : > { %p1195_p3 = pneg %p1194_p0 }
  0x25   : > { %p1200_p7 = pnand %p1198_p5, %p1195_p3 }
  0x27   : > { %1203 = shalt.err (!%p1200_p7)
}
  0x28   : > { %s1204_s17 = scalar_lea.vmem %s1501_s28, 1024  ;;  %p1212_p2 = scmp.lt.s32.totalorder %s1501_s28, %s1501_s28 }
  0x29   : > { %p1205_p9 = scmp.ne.s32.totalorder %s1501_s28, %s1204_s17  ;;  %p1213_p6 = scmp.lt.s32.totalorder %s1204_s17, %s1204_s17 }
  0x2b   : > { %p1207_p10 = pnand %p1205_p9, %p1524_p13  ;;  %p1214_p12 = por %p1213_p6, %p1212_p2 }
  0x2d   : > { %p1208_p1 = pneg %p1207_p10 }
  0x2f   : > { %p1215_p0 = pnand %p1214_p12, %p1208_p1 }
  0x31   : > { %1218 = shalt.err (!%p1215_p0)
}
  0x32   : > { %s1831_s23 = smov 64   ;;  %s1833_s27 = smov 4  }
  0x33   : > { %1090 = dma.hbm_to_vmem [thread:$0]  (!%p1508_p11), %s1843_s2, 1024, %s1501_s28, [#allocation6], %s1831_s23, %s1831_s23, %s1833_s27  }
  0x34   : > { %s1845_s3 = sld [smem:[#allocation19_spill]] }
  0x3a   : > { %s1219_s11 = scalar_lea.hbm %s1845_s3, 1024 }
  0x3b   : > { %p1220_p1 = scmp.ne.s32.totalorder %s1845_s3, %s1219_s11  ;;  %p1226_p10 = scmp.lt.u32.totalorder %s1219_s11, %s1845_s3 }
  0x3d   : > { %p1222_p2 = pnand %p1220_p1, %p1524_p13 }
  0x3f   : > { %p1223_p6 = pneg %p1222_p2 }
  0x41   : > { %p1228_p3 = pnand %p1226_p10, %p1223_p6 }
  0x43   : > { %1231 = shalt.err (!%p1228_p3)
}
  0x44   : > { %s1232_s28 = scalar_lea.vmem %s1512_s6, 1024  ;;  %p1240_p12 = scmp.lt.s32.totalorder %s1512_s6, %s1512_s6 }
  0x45   : > { %p1233_p5 = scmp.ne.s32.totalorder %s1512_s6, %s1232_s28  ;;  %p1241_p0 = scmp.lt.s32.totalorder %s1232_s28, %s1232_s28 }
  0x47   : > { %p1235_p7 = pnand %p1233_p5, %p1524_p13  ;;  %p1242_p1 = por %p1241_p0, %p1240_p12 }
  0x49   : > { %p1236_p9 = pneg %p1235_p7 }
  0x4b   : > { %p1243_p2 = pnand %p1242_p1, %p1236_p9 }
  0x4d   : > { %1246 = shalt.err (!%p1243_p2)
}
  0x4e   : > { %1093 = dma.hbm_to_vmem [thread:$0]  (!%p1508_p11), %s1845_s3, 1024, %s1512_s6, [#allocation9], %s1831_s23, %s1831_s23, %s1833_s27  }
  0x4f   : > { %s1846_s4 = sld [smem:[#allocation20_spill]] }
  0x55   : > { %s1247_s10 = scalar_lea.hbm %s1846_s4, 1024 }
  0x56   : > { %p1248_p6 = scmp.ne.s32.totalorder %s1846_s4, %s1247_s10  ;;  %p1254_p5 = scmp.lt.u32.totalorder %s1247_s10, %s1846_s4 }
  0x58   : > { %p1250_p10 = pnand %p1248_p6, %p1524_p13 }
  0x5a   : > { %p1251_p3 = pneg %p1250_p10 }
  0x5c   : > { %p1256_p7 = pnand %p1254_p5, %p1251_p3 }
  0x5e   : > { %1259 = shalt.err (!%p1256_p7)
}
  0x5f   : > { %s1260_s16 = scalar_lea.vmem %s210_s8, 1024  ;;  %p1268_p1 = scmp.lt.s32.totalorder %s210_s8, %s210_s8 }
  0x60   : > { %p1261_p9 = scmp.ne.s32.totalorder %s210_s8, %s1260_s16  ;;  %p1269_p2 = scmp.lt.s32.totalorder %s1260_s16, %s1260_s16 }
  0x62   : > { %p1263_p12 = pnand %p1261_p9, %p1524_p13  ;;  %p1270_p4 = por %p1269_p2, %p1268_p1 }
  0x64   : > { %p1264_p0 = pneg %p1263_p12 }
  0x66   : > { %p1271_p8 = pnand %p1270_p4, %p1264_p0 }
  0x68   : > { %1274 = shalt.err (!%p1271_p8)
}
  0x69   : > { %1096 = dma.hbm_to_vmem [thread:$0]  (!%p1508_p11), %s1846_s4, 1024, %s210_s8, [#allocation9], %s1831_s23, %s1831_s23, %s1833_s27  }
  0x6a   : > { %s1597_s14 = sadd.s32 1, %s1413_s21   ;;  %s32_s17 = sadd.s32 1, %s1409_s20 }
  0x6b   : > { %s29_s29 = ssub.s32 %s1413_s21, %s1597_s14  ;;  %p39_p8 = scmp.ne.s32.totalorder %s1409_s20, %s1405_s19 }
  0x6c   : > { %p30_p4 = scmp.eq.s32.totalorder %s29_s29, 0  ;;  %p40_p13 = scmp.eq.s32.totalorder %s1413_s21, 0 }
  0x6d   : > { %p1111_p6 = scmp.lt.s32.totalorder %s1413_s21, 2  ;;  %p1847_p3 = scmp.eq.s32.totalorder %s1478_s22, 1 }
  0x6e   : > { %s1607_s30 = scalar_select %p30_p4, %s1409_s20, %s32_s17  }
  0x6f   : > { %p41_p10 = por %p40_p13, %p39_p8  ;;  %p1611_p5 = por %p1847_p3, %p39_p8 }
  0x70   : > { %s223_s9 = sand.u32 1, %s1409_s20   ;;  %s963_s10 = sshll.u32 %s1413_s21, 7 }
  0x71   : > { %s1617_s8 = sshll.u32 %s223_s9, 3  ;;  %s1849_s0 = sld [smem:[#allocation17_spill]] }
  0x72   : > { %s227_s15 = scalar_lea.vmem [#allocation2], %s1617_s8  ;;  %p1625_p11 = pnand %p1111_p6, %p41_p10 }
  0x73   : > { %s234_s16 = sshll.u32 %s227_s15, 4  ;;  %s1634_s17 = scalar_lea.hbm %s1823_s1, %s963_s10  ;;  %s1629_s16 = int_to_ptr.vmem [resolvable:$true] %s234_s16 }
  0x74   : > { %s1636_s11 = scalar_lea.sflag [#allocation3], %s223_s9  ;;  %p1277_p9 = pneg %p1625_p11 }
  0x77   : > { %s1622_s13 = scalar_lea.hbm %s1849_s0, %s963_s10  ;;  %s1280_s27 = scalar_lea.hbm %s1849_s0, 256 }
  0x78   : > { %s1275_s12 = scalar_lea.hbm %s1622_s13, 128  ;;  %p1281_p1 = scmp.lt.u32.totalorder %s1622_s13, %s1849_s0 }
  0x79   : > { %p1276_p7 = scmp.ne.s32.totalorder %s1622_s13, %s1275_s12  ;;  %p1282_p2 = scmp.lt.u32.totalorder %s1280_s27, %s1275_s12 }
  0x7a   : > { %p1284_p8 = scmp.lt.u32.totalorder %s1275_s12, %s1622_s13 }
  0x7b   : > { %p1278_p12 = pnand %p1277_p9, %p1276_p7  ;;  %p1283_p4 = por %p1282_p2, %p1281_p1 }
  0x7d   : > { %p1279_p0 = pneg %p1278_p12  ;;  %p1285_p13 = por %p1284_p8, %p1283_p4 }
  0x7f   : > { %p1286_p6 = pnand %p1285_p13, %p1279_p0 }
  0x81   : > { %1289 = shalt.err (!%p1286_p6)
}
  0x82   : > { %s1290_s9 = scalar_lea.vmem %s1629_s16, 128  ;;  %s1420_s23 = smov [#allocation2]  }
  0x83   : > { %p1291_p10 = scmp.ne.s32.totalorder %s1629_s16, %s1290_s9  ;;  %s1295_s10 = sshll.u32 %s1420_s23, 4  ;;  %s1296_s10 = int_to_ptr.vmem [resolvable:$false] %s1295_s10 }
  0x84   : > { %s1297_s2 = scalar_lea.vmem %s1296_s10, 256  ;;  %p1298_p12 = scmp.lt.s32.totalorder %s1629_s16, %s1296_s10 }
  0x85   : > { %p1293_p3 = pnand %p1291_p10, %p1277_p9  ;;  %p1299_p1 = scmp.lt.s32.totalorder %s1297_s2, %s1290_s9 }
  0x87   : > { %p1294_p7 = pneg %p1293_p3  ;;  %p1300_p2 = por %p1299_p1, %p1298_p12 }
  0x89   : > { %p1301_p4 = pnand %p1300_p2, %p1294_p7 }
  0x8b   : > { %1304 = shalt.err (!%p1301_p4)
}
  0x8c   : > { %s1851_s3 = smov 4   ;;  %s1852_s27 = smov 64  }
  0x8d   : > { %1100 = dma.hbm_to_vmem [thread:$0]  (!%p1625_p11), %s1622_s13, 128, %s1629_s16, %s1636_s11, %s1852_s27, %s1852_s27, %s1851_s3  }
  0x8e   : > { %s248_s28 = scalar_lea.vmem [#allocation5], %s1617_s8  ;;  %s244_s12 = sand.u32 1, %s1413_s21  }
  0x8f   : > { %s255_s29 = sshll.u32 %s248_s28, 4  ;;  %s1671_s15 = scalar_lea.sflag [#allocation6], %s244_s12  ;;  %s1669_s29 = int_to_ptr.vmem [resolvable:$true] %s255_s29 }
  0x90   : > { %s1305_s9 = scalar_lea.hbm %s1634_s17, 128  ;;  %s1310_s2 = scalar_lea.hbm %s1823_s1, 256 }
  0x91   : > { %p1306_p0 = scmp.ne.s32.totalorder %s1634_s17, %s1305_s9  ;;  %p1311_p6 = scmp.lt.u32.totalorder %s1634_s17, %s1823_s1 }
  0x92   : > { %p1312_p10 = scmp.lt.u32.totalorder %s1310_s2, %s1305_s9  ;;  %p1314_p7 = scmp.lt.u32.totalorder %s1305_s9, %s1634_s17 }
  0x93   : > { %p1308_p8 = pnand %p1306_p0, %p1277_p9 }
  0x94   : > { %p1313_p3 = por %p1312_p10, %p1311_p6 }
  0x95   : > { %p1309_p13 = pneg %p1308_p8 }
  0x96   : > { %p1315_p12 = por %p1314_p7, %p1313_p3 }
  0x98   : > { %p1316_p1 = pnand %p1315_p12, %p1309_p13 }
  0x9a   : > { %1319 = shalt.err (!%p1316_p1)
}
  0x9b   : > { %s1320_s8 = scalar_lea.vmem %s1669_s29, 128  ;;  %s1421_s13 = smov [#allocation5]  }
  0x9c   : > { %p1321_p2 = scmp.ne.s32.totalorder %s1669_s29, %s1320_s8  ;;  %s1325_s16 = sshll.u32 %s1421_s13, 4  ;;  %s1326_s16 = int_to_ptr.vmem [resolvable:$false] %s1325_s16 }
  0x9d   : > { %s1327_s0 = scalar_lea.vmem %s1326_s16, 256  ;;  %p1328_p8 = scmp.lt.s32.totalorder %s1669_s29, %s1326_s16 }
  0x9e   : > { %p1323_p4 = pnand %p1321_p2, %p1277_p9  ;;  %p1329_p6 = scmp.lt.s32.totalorder %s1327_s0, %s1320_s8 }
  0xa0   : > { %p1324_p0 = pneg %p1323_p4  ;;  %p1330_p10 = por %p1329_p6, %p1328_p8 }
  0xa2   : > { %p1331_p3 = pnand %p1330_p10, %p1324_p0 }
  0xa4   : > { %1334 = shalt.err (!%p1331_p3)
}
  0xa5   : > { %1103 = dma.hbm_to_vmem [thread:$0]  (!%p1625_p11), %s1634_s17, 128, %s1669_s29, %s1671_s15, %s1852_s27, %s1852_s27, %s1851_s3  }
  0xa6   : > { %p1853_p9 = scmp.ne.s32.totalorder %s1841_s26, 0 }
  0xa7   : > { %s1703_s4 = sand.u32 (!%p1853_p9), 1, %s1405_s19   ;;  %p1854_p13 = scmp.ne.s32.totalorder (!%p1853_p9), %s1839_s24, 0 }
  0xa8   : > { %267 = sbr.rel (%p1853_p9) target bundleno = 1050 (0x41a), region = 40  ;;  %s925_s11 = sshll.u32 (!%p1853_p9), %s1703_s4, 3 }
  0xa9   : > { %s270_s28 = scalar_lea.sflag (!%p1853_p9), [#allocation3], %s1703_s4  ;;  %s1707_s12 = scalar_lea.vmem (!%p1853_p9), [#allocation2], %s925_s11 }
  0xaf   : > { %1380 = dma.done.wait (%p1854_p13), %s270_s28, 128  }
  0xb0   : > { %1382 = vsyncadd (%p1854_p13), %s270_s28, 4294967168  ;;  %s278_s6 = sand.u32 1, %s1478_s22   ;;  %s1714_s17 = scalar_lea.vmem [#allocation5], %s925_s11 }
  0xb1   : > { %s279_s26 = scalar_lea.sflag [#allocation6], %s278_s6 }
  0xb2   : > { %1384 = dma.done.wait (%p1854_p13), %s279_s26, 128  }
  0xb3   : > { %1386 = vsyncadd (%p1854_p13), %s279_s26, 4294967168  ;;  %p1855_p11 = scmp.eq.s32.totalorder %s1478_s22, 0 }
  0xb5   : > { %1388 = dma.done.wait (%p1855_p11), [#allocation6], 1024   ;;  %p1856_p7 = pmov %p1855_p11 }
  0xb7   : > { %1390 = vsyncadd (%p1856_p7), [#allocation6], 4294966272  ;;  %p1857_p12 = pmov %p1856_p7 }
  0xb8   : > { %p1858_p1 = pmov %p1856_p7 }
  0xb9   : > { %1392 = dma.done.wait (%p1857_p12), [#allocation9], 2048  }
  0xba   : > { %1394 = vsyncadd (%p1858_p1), [#allocation9], 4294965248  ;;  %v1422_v0 = vmov 0.0   ;;  %vm1423_vm0 = vmmov 0   ;;  %v1157_v1 = vld [vmem:[#allocation8] sm:$0xff]   ;;  %v1159_v3 = vld [vmem:[#allocation8 + $0x8] sm:$0xff]  }
  0xbb   : > { %1017 = vmatprep.subr.bf16.mxu1 %v1422_v0  ;;  %997 = vmatprep.subr.bf16.mxu0 %v1422_v0  ;;  %v1158_v2 = vld [vmem:[#allocation7] sm:$0xff]   ;;  %v1160_v4 = vld [vmem:[#allocation7 + $0x8] sm:$0xff]   ;;  %v1161_v5 = vld [vmem:[#allocation8 + $0x10] sm:$0xff]   ;;  %vm704_vm1 = vcmask 130048   ;;  %s930_s24 = sshll.u32 %s1703_s4, 4  ;;  %s965_s29 = sshll.u32 %s1478_s22, 8 }
  0xbc   : > { %1033 = vmatprep.mubr.msk.bf16.mxu1 %vm1423_vm0, %v1422_v0  ;;  %1013 = vmatprep.mubr.msk.bf16.mxu0 %vm1423_vm0, %v1422_v0  ;;  %v1162_v6 = vld [vmem:[#allocation7 + $0x10] sm:$0xff]   ;;  %v1163_v7 = vld [vmem:[#allocation8 + $0x18] sm:$0xff]   ;;  %v1165_v9 = vld [vmem:[#allocation8 + $0x20] sm:$0xff]   ;;  %s325_s3 = scalar_lea.vmem [#allocation11], %s930_s24  ;;  %s1778_s23 = scalar_lea.hbm %s1827_s5, %s965_s29 }
  0xbd   : > { %1018 = vmatpush3.bf16.msra.mxu1 %v1157_v1  ;;  %998 = vmatpush3.bf16.msra.mxu0 %v1158_v2  ;;  %v1164_v8 = vld [vmem:[#allocation7 + $0x18] sm:$0xff]   ;;  %v1166_v10 = vld [vmem:[#allocation7 + $0x20] sm:$0xff]   ;;  %v1167_v11 = vld [vmem:[#allocation8 + $0x28] sm:$0xff]   ;;  %s788_s27 = sshll.u32 %s325_s3, 4  ;;  %s775_s22 = scalar_lea.sflag [#allocation4], %s1703_s4  ;;  %s1773_s27 = int_to_ptr.vmem [resolvable:$true] %s788_s27 }
  0xbe   : > { %1019 = vmatprep.subr.bf16.mxu1 %v1422_v0  ;;  %999 = vmatprep.subr.bf16.mxu0 %v1422_v0  ;;  %v1168_v12 = vld [vmem:[#allocation7 + $0x28] sm:$0xff]   ;;  %v1169_v13 = vld [vmem:[#allocation8 + $0x30] sm:$0xff]   ;;  %v1171_v15 = vld [vmem:[#allocation8 + $0x38] sm:$0xff]   ;;  %s1335_s10 = scalar_lea.vmem %s1773_s27, 256  ;;  %s1424_s2 = smov [#allocation11]  }
  0xbf   : > { %v1170_v14 = vld [vmem:[#allocation7 + $0x30] sm:$0xff]   ;;  %v1172_v16 = vld [vmem:[#allocation7 + $0x38] sm:$0xff]   ;;  %v1174_v18 = vld [vmem:[%s1707_s12] sm:$0xff]   ;;  %p1336_p2 = scmp.ne.s32.totalorder %s1773_s27, %s1335_s10  ;;  %s1339_s8 = sshll.u32 %s1424_s2, 4  ;;  %s1340_s8 = int_to_ptr.vmem [resolvable:$false] %s1339_s8 }
  0xc0   : > { %v1173_v17 = vld [vmem:[%s1714_s17] sm:$0xff]   ;;  %v1175_v19 = vld [vmem:[#allocation10] sm:$0xff]   ;;  %v1176_v20 = vld [vmem:[#allocation10 + $0x8] sm:$0xff]   ;;  %s1341_s13 = scalar_lea.vmem %s1340_s8, 512  ;;  %p1342_p8 = scmp.lt.s32.totalorder %s1773_s27, %s1340_s8 }
  0xc1   : > { %1020 = vmatpush3.bf16.msra.mxu1 %v1159_v3  ;;  %1000 = vmatpush3.bf16.msra.mxu0 %v1160_v4  ;;  %v1177_v21 = vld [vmem:[#allocation10 + $0x10] sm:$0xff]   ;;  %v1178_v22 = vld [vmem:[#allocation10 + $0x18] sm:$0xff]   ;;  %v1179_v23 = vld [vmem:[#allocation10 + $0x20] sm:$0xff]   ;;  %p1337_p4 = pnand %p1336_p2, %p1611_p5  ;;  %p1343_p6 = scmp.lt.s32.totalorder %s1341_s13, %s1335_s10 }
  0xc2   : > { %1021 = vmatprep.subr.bf16.mxu1 %v1422_v0  ;;  %1001 = vmatprep.subr.bf16.mxu0 %v1422_v0  ;;  %v1180_v24 = vld [vmem:[#allocation10 + $0x28] sm:$0xff]   ;;  %v1181_v25 = vld [vmem:[#allocation10 + $0x30] sm:$0xff]   ;;  %v1182_v26 = vld [vmem:[#allocation10 + $0x38] sm:$0xff]  }
  0xc3   : > { %p1338_p0 = pneg %p1337_p4  ;;  %p1344_p10 = por %p1343_p6, %p1342_p8 }
  0xc5   : > { %1022 = vmatpush3.bf16.msra.mxu1 %v1161_v5  ;;  %1002 = vmatpush3.bf16.msra.mxu0 %v1162_v6  ;;  %p1345_p3 = pnand %p1344_p10, %p1338_p0 }
  0xc6   : > { %1023 = vmatprep.subr.bf16.mxu1 %v1422_v0  ;;  %1003 = vmatprep.subr.bf16.mxu0 %v1422_v0 }
  0xc9   : > { %1024 = vmatpush3.bf16.msra.mxu1 %v1163_v7  ;;  %1004 = vmatpush3.bf16.msra.mxu0 %v1164_v8 }
  0xca   : > { %1025 = vmatprep.subr.bf16.mxu1 %v1422_v0  ;;  %1005 = vmatprep.subr.bf16.mxu0 %v1422_v0 }
  0xcd   : > { %1026 = vmatpush3.bf16.msra.mxu1 %v1165_v9  ;;  %1006 = vmatpush3.bf16.msra.mxu0 %v1166_v10 }
  0xce   : > { %1027 = vmatprep.subr.bf16.mxu1 %v1422_v0  ;;  %1007 = vmatprep.subr.bf16.mxu0 %v1422_v0 }
  0xd1   : > { %1028 = vmatpush3.bf16.msra.mxu1 %v1167_v11  ;;  %1008 = vmatpush3.bf16.msra.mxu0 %v1168_v12 }
  0xd2   : > { %1029 = vmatprep.subr.bf16.mxu1 %v1422_v0  ;;  %1009 = vmatprep.subr.bf16.mxu0 %v1422_v0 }
  0xd5   : > { %1030 = vmatpush3.bf16.msra.mxu1 %v1169_v13  ;;  %1010 = vmatpush3.bf16.msra.mxu0 %v1170_v14 }
  0xd6   : > { %1031 = vmatprep.subr.bf16.mxu1 %v1422_v0  ;;  %1011 = vmatprep.subr.bf16.mxu0 %v1422_v0 }
  0xd9   : > { %1032 = vmatpush3.bf16.msra.mxu1 %v1171_v15  ;;  %1012 = vmatpush3.bf16.msra.mxu0 %v1172_v16 }
  0xda   : > { %1057 = vmatprep.subr.bf16.mxu1 %v1422_v0  ;;  %1037 = vmatprep.subr.bf16.mxu0 %v1422_v0 }
  0xdc   : > { %1034 = vmatmul.mubr.bf16.vlgmr.msra.gmra.mrb[0].mxu1 %v1173_v17  ;;  %1014 = vmatmul.mubr.bf16.vlgmr.msra.gmra.mrb[0].mxu0 %v1174_v18 }
  0xdd   : > { %1059 = vmatprep.mubr.msk.bf16.mxu1 %vm1423_vm0, %v1422_v0  ;;  %1053 = vmatprep.mubr.msk.bf16.mxu0 %vm1423_vm0, %v1422_v0 }
  0xde   : > { %1038 = vmatpush3.bf16.msra.mxu0 %v1175_v19 }
  0xdf   : > { %1039 = vmatprep.subr.bf16.mxu0 %v1422_v0 }
  0xe2   : > { %1040 = vmatpush3.bf16.msra.mxu0 %v1176_v20 }
  0xe3   : > { %1041 = vmatprep.subr.bf16.mxu0 %v1422_v0 }
  0xe6   : > { %1042 = vmatpush3.bf16.msra.mxu0 %v1177_v21 }
  0xe7   : > { %1043 = vmatprep.subr.bf16.mxu0 %v1422_v0 }
  0xea   : > { %1044 = vmatpush3.bf16.msra.mxu0 %v1178_v22 }
  0xeb   : > { %1045 = vmatprep.subr.bf16.mxu0 %v1422_v0 }
  0xee   : > { %1046 = vmatpush3.bf16.msra.mxu0 %v1179_v23 }
  0xef   : > { %1047 = vmatprep.subr.bf16.mxu0 %v1422_v0 }
  0xf2   : > { %1048 = vmatpush3.bf16.msra.mxu0 %v1180_v24 }
  0xf3   : > { %1049 = vmatprep.subr.bf16.mxu0 %v1422_v0 }
  0xf6   : > { %1050 = vmatpush3.bf16.msra.mxu0 %v1181_v25 }
  0xf7   : > { %1051 = vmatprep.subr.bf16.mxu0 %v1422_v0 }
  0xfa   : > { %1052 = vmatpush3.bf16.msra.mxu0 %v1182_v26 }
  0xfd   : > { %1054 = vmatmul.mubr.bf16.vlgmr.msra.gmra.mrb[4].mxu0 %v1173_v17 }
 0x1af   : > { %v546_v27 = vpop.f32.mrb[0].mxu1  ;;  %v435_v29 = vpop.f32.mrb[0].mxu0 }
 0x1b0   : > { %v1035_v28 = vpop.f32.mrb[1].mxu1  ;;  %v658_v31 = vmul.f32 0.17677669, %v435_v29  ;;  %v1015_v32 = vpop.f32.mrb[1].mxu0 }
 0x1b1   : > { %v549_v30 = vpop.f32.mrb[2].mxu1  ;;  %v438_v35 = vpop.f32.mrb[2].mxu0 }
 0x1b2   : > { %v661_v33 = vpack.c.bf16 %v549_v30, %v546_v27  ;;  %v1036_v34 = vpop.f32.mrb[3].mxu1  ;;  %v659_v36 = vmul.f32 0.17677669, %v438_v35  ;;  %v1016_v37 = vpop.f32.mrb[3].mxu0 }
 0x1b4   : > { %1058 = vmatpush3.bf16.xpose.msra.mxu1 %v661_v33  ;;  %v660_v38 = vpack.c.bf16 %v659_v36, %v658_v31 }
 0x1b5   : > { %1063 = vmatprep.subr.bf16.mxu1 %v1422_v0 }
 0x1bb   : > { %1060 = vmatmul.mubr.bf16.vlgmr.msra.gmra.mrb[4].mxu1 %v660_v38 }
 0x1bc   : > { %1065 = vmatprep.mubr.msk.bf16.mxu1 %vm1423_vm0, %v1422_v0 }
 0x1d0   : > { %v651_v45 = vpop.f32.mrb[4].mxu0 }
 0x1d1   : > { %v1055_v46 = vpop.f32.mrb[5].mxu0 }
 0x1d2   : > { %v654_v47 = vpop.f32.mrb[6].mxu0 }
 0x1d3   : > { %v662_v48 = vpack.c.bf16 %v654_v47, %v651_v45  ;;  %v1056_v49 = vpop.f32.mrb[7].mxu0 }
 0x1d5   : > { %1064 = vmatpush3.bf16.msra.mxu1 %v662_v48 }
 0x28e   : > { %v697_v39 = vpop.f32.mrb[4].mxu1 }
 0x28f   : > { %v1061_v40 = vpop.f32.mrb[5].mxu1  ;;  %v705_v41 = vsel %vm704_vm1, %v697_v39, -inf }
 0x290   : > { %706 = vmax.xlane.f32.xlu0 %v705_v41  ;;  %v700_v42 = vpop.f32.mrb[6].mxu1 }
 0x291   : > { %v1062_v43 = vpop.f32.mrb[7].mxu1  ;;  %v708_v44 = vsel %vm704_vm1, %v700_v42, -inf }
 0x294   : > { %709 = vmax.xlane.f32.xlu0 %v708_v44 }
 0x31d   : > { %v707_v50 = vpop.xlane.xlu0 %706 }
 0x31e   : > { %v711_v51 = vsub.f32 %v697_v39, %v707_v50 }
 0x320   : > { %v713_v52 = vmul.f32 1.442695, %v711_v51 }
 0x321   : > { %v710_v53 = vpop.xlane.xlu0 %709 }
 0x322   : > { %1183 = vpow2.f32 %v713_v52  ;;  %v712_v54 = vsub.f32 %v700_v42, %v710_v53 }
 0x324   : > { %v715_v55 = vmul.f32 1.442695, %v712_v54 }
 0x326   : > { %1185 = vpow2.f32 %v715_v55 }
 0x32c   : > { %v1184_v56 = vpop.eup %1183 }
 0x32d   : > { %v717_v57 = vsel %vm704_vm1, %v1184_v56, 0.0 }
 0x32e   : > { %718 = vadd.xlane.f32.xlu1 %v717_v57 }
 0x330   : > { %v1186_v58 = vpop.eup %1185 }
 0x331   : > { %v720_v59 = vsel %vm704_vm1, %v1186_v58, 0.0  ;;  %v723_v60 = vpack.c.bf16 %v1186_v58, %v1184_v56 }
 0x332   : > { %721 = vadd.xlane.f32.xlu1 %v720_v59 }
 0x333   : > { %1066 = vmatmul.mubr.msk.bf16.vlgmr.msra.gmra.mrb[8].mxu1 %vm704_vm1, %v723_v60 }
 0x3bb   : > { %v719_v61 = vpop.xlane.xlu1 %718 }
 0x3bc   : > { %1187 = vrcp.f32 %v719_v61 }
 0x3bf   : > { %v722_v62 = vpop.xlane.xlu1 %721 }
 0x3c0   : > { %1189 = vrcp.f32 %v722_v62 }
 0x3c6   : > { %v1188_v63 = vpop.eup %1187 }
 0x3ca   : > { %v1190_v3 = vpop.eup %1189 }
 0x406   : > { %v761_v0 = vpop.f32.mrb[8].mxu1 }
 0x407   : > { %v770_v1 = vmul.f32 %v1188_v63, %v761_v0  ;;  %v1067_v2 = vpop.f32.mrb[9].mxu1 }
 0x408   : > { %v764_v4 = vpop.f32.mrb[10].mxu1 }
 0x409   : > { %772 = vst [vmem:[%s325_s3] sm:$0xff] %v770_v1  ;;  %v771_v5 = vmul.f32 %v1190_v3, %v764_v4  ;;  %v1068_v6 = vpop.f32.mrb[11].mxu1 }
 0x40b   : > { %773 = vst [vmem:[%s325_s3 + $0x8] sm:$0xff] %v771_v5 }
 0x40c   : > { %1348 = shalt.err (!%p1345_p3)
}
 0x40d   : > { %s1349_s16 = scalar_lea.hbm %s1778_s23, 256  ;;  %s1353_s28 = scalar_lea.hbm %s1827_s5, 512 }
 0x40e   : > { %p1350_p9 = scmp.ne.s32.totalorder %s1778_s23, %s1349_s16  ;;  %p1354_p7 = scmp.lt.u32.totalorder %s1778_s23, %s1827_s5 }
 0x40f   : > { %p1355_p12 = scmp.lt.u32.totalorder %s1353_s28, %s1349_s16  ;;  %p1357_p2 = scmp.lt.u32.totalorder %s1349_s16, %s1778_s23 }
 0x410   : > { %p1351_p13 = pnand %p1350_p9, %p1611_p5 }
 0x411   : > { %p1356_p1 = por %p1355_p12, %p1354_p7 }
 0x412   : > { %p1352_p11 = pneg %p1351_p13 }
 0x413   : > { %p1358_p4 = por %p1357_p2, %p1356_p1 }
 0x415   : > { %p1359_p0 = pnand %p1358_p4, %p1352_p11 }
 0x417   : > { %1362 = shalt.err (!%p1359_p0)
}
 0x418   : > { %s1425_s26 = smov 128   ;;  %s1426_s17 = smov 8  }
 0x419   : > { %1085 = dma.vmem_to_hbm [thread:$0]  (%p1611_p5), %s1773_s27, 256, %s1778_s23, %s775_s22, %s1425_s26, %s1425_s26, %s1426_s17  }
 0x41a PF: > { %s803_s24 = sand.u32 1, %s1401_s18   ;;  %p1859_p8 = scmp.ne.s32.totalorder %s1840_s25, 0 }
 0x41b   : > { %p1860_p6 = scmp.ge.s32.totalorder %s1413_s21, 2  ;;  %s804_s3 = scalar_lea.sflag [#allocation4], %s803_s24 }
 0x41d   : > { %p1105_p10 = pnand %p1860_p6, %p1859_p8 }
 0x41f   : > { %1396 = dma.done.wait (!%p1105_p10), %s804_s3, 256  }
 0x420   : > { %1398 = vsyncadd (!%p1105_p10), %s804_s3, 4294967040  ;;  %p22_p3 = scmp.ge.s32.totalorder %s1597_s14, 4   ;;  %s1861_s18 = smov %s1405_s19 }
 0x421   : > { %s1862_s19 = smov %s1409_s20  ;;  %s1863_s20 = smov %s1607_s30 }
 0x422   : > { %s1864_s21 = smov %s1597_s14  ;;  %24 = sbr.rel (!%p22_p3) target bundleno = 13 (0xd), region = 110 }
 0x429   :  { %809 = vsyncpa [#allocation3], 1 }
 0x42a   :  { %811 = vsyncpa [#allocation3 + $0x1], 1 }
 0x42b   :  { %812 = vsyncpa [#allocation6], 1 }
 0x42c   :  { %814 = vsyncpa [#allocation6 + $0x1], 1 }
 0x42d   :  { %815 = vsyncpa [#allocation9], 1 }
 0x42e   :  { %816 = vsyncpa [#allocation4], 1 }
 0x42f   :  { %818 = vsyncpa [#allocation4 + $0x1], 1 }

</bundles_post_ra>
